<compile_context>
chip_gen: v7x
topology: tpu7x:2x2x1
jax: 0.10.0
libtpu: 0.0.40
codegen_flags: <defaults>
</compile_context>

<pallas_src>
import functools

import jax
import jax.numpy as jnp
from jax.experimental import pallas as pl
from jax.experimental.pallas import tpu as pltpu

TIDY_PAD = 128  # pad tidy output channels (6 / 9) to a full lane width


# ----------------------------------------------------------------------------
# Fused Pallas kernel:
#   down = relu(A @ Wd + bd)      (accumulated over K tiles, f32, MXU in bf16)
#   tidy = down @ Wt + bt         (computed once in the last-K epilogue)
# ----------------------------------------------------------------------------
def _fused_down_tidy_kernel(a_ref, wd_ref, bd_ref, wt_ref, bt_ref,
                            down_ref, tidy_ref, *, n_k):
    def epilogue(acc_f32):
        d = jnp.maximum(acc_f32 + bd_ref[...], 0.0)
        down_ref[...] = d
        tidy_ref[...] = (
            jnp.dot(d.astype(jnp.bfloat16), wt_ref[...],
                    preferred_element_type=jnp.float32)
            + bt_ref[...]
        )

    if n_k == 1:
        # Single-shot: no accumulation machinery needed (down2/down3 path).
        epilogue(jnp.dot(a_ref[...], wd_ref[...],
                         preferred_element_type=jnp.float32))
    else:
        k = pl.program_id(1)

        @pl.when(k == 0)
        def _():
            down_ref[...] = jnp.zeros_like(down_ref)

        # Accumulate directly into the VMEM-resident f32 output block.
        down_ref[...] += jnp.dot(a_ref[...], wd_ref[...],
                                 preferred_element_type=jnp.float32)

        @pl.when(k == n_k - 1)
        def _():
            epilogue(down_ref[...])


def _round_up(x, m):
    return ((x + m - 1) // m) * m


def _choose_tm(M):
    """Return (Mp, tm): padded M and M-tile size (multiple of 8, capped at 256)."""
    Mp8 = _round_up(M, 8)
    if Mp8 <= 256:
        return Mp8, Mp8
    tm = 256
    return _round_up(M, tm), tm


def _choose_tk(K):
    """K tile size: single shot for small K, otherwise largest divisor <= 2048."""
    if K <= 4096:
        return K
    for cand in (2048, 1024, 512, 256, 128):
        if K % cand == 0:
            return cand
    return K


def _im2col(x_nhwc, kh, kw, stride, pad):
    # TODO(synk): for stride-1 down1 the 9x-inflated patch tensor could be
    # avoided by folding the (kh,kw) taps into the K grid with element-offset
    # BlockSpecs into the padded input; kept as plain-JAX glue here.
    n, h, w, c = x_nhwc.shape
    xp = jnp.pad(x_nhwc, ((0, 0), (pad, pad), (pad, pad), (0, 0)))
    ho = (h + 2 * pad - kh) // stride + 1
    wo = (w + 2 * pad - kw) // stride + 1
    cols = []
    for i in range(kh):
        for j in range(kw):
            cols.append(xp[:, i: i + ho * stride: stride,
                           j: j + wo * stride: stride, :])
    patches = jnp.concatenate(cols, axis=-1)          # (n, ho, wo, kh*kw*c)
    return patches.reshape(n * ho * wo, kh * kw * c), (n, ho, wo)


def fused_conv_block(x_nhwc, down_w, down_b, tidy_w, tidy_b, *, stride, pad):
    """relu(conv3x3(x)) and its fused 1x1 tidy head, both via one pallas_call.

    Returns (down_nhwc f32, tidy_nhwc f32)."""
    kh, kw, cin, cout = down_w.shape                  # cout == 128
    n_tidy = tidy_w.shape[-1]

    # im2col in bf16 (halves HBM traffic on the 9x-inflated patches).
    patches, (n, ho, wo) = _im2col(x_nhwc.astype(jnp.bfloat16),
                                   kh, kw, stride, pad)
    M, K = patches.shape

    Mp, tm = _choose_tm(M)
    if Mp > M:
        patches = jnp.pad(patches, ((0, Mp - M), (0, 0)))
    tk = _choose_tk(K)
    n_k = K // tk
    grid = (Mp // tm, n_k)

    # bf16 weights for the MXU; f32 biases.
    wd = down_w.reshape(kh * kw * cin, cout).astype(jnp.bfloat16)
    bd = down_b.reshape(1, cout).astype(jnp.float32)
    wt = jnp.zeros((cout, TIDY_PAD), jnp.bfloat16)
    wt = wt.at[:, :n_tidy].set(tidy_w.reshape(cout, n_tidy).astype(jnp.bfloat16))
    bt = jnp.zeros((1, TIDY_PAD), jnp.float32)
    bt = bt.at[:, :n_tidy].set(tidy_b.reshape(1, n_tidy))

    kernel = functools.partial(_fused_down_tidy_kernel, n_k=n_k)

    down_flat, tidy_flat = pl.pallas_call(
        kernel,
        out_shape=(
            jax.ShapeDtypeStruct((Mp, cout), jnp.float32),
            jax.ShapeDtypeStruct((Mp, TIDY_PAD), jnp.float32),
        ),
        grid_spec=pltpu.PrefetchScalarGridSpec(
            num_scalar_prefetch=0,
            grid=grid,
            in_specs=[
                pl.BlockSpec((tm, tk), lambda m, k: (m, k)),      # A patches
                pl.BlockSpec((tk, cout), lambda m, k: (k, 0)),    # W_down
                pl.BlockSpec((1, cout), lambda m, k: (0, 0)),     # b_down
                pl.BlockSpec((cout, TIDY_PAD), lambda m, k: (0, 0)),  # W_tidy
                pl.BlockSpec((1, TIDY_PAD), lambda m, k: (0, 0)),     # b_tidy
            ],
            out_specs=[
                pl.BlockSpec((tm, cout), lambda m, k: (m, 0)),
                pl.BlockSpec((tm, TIDY_PAD), lambda m, k: (m, 0)),
            ],
        ),
        compiler_params=pltpu.CompilerParams(
            dimension_semantics=("parallel", "arbitrary"),
        ),
    )(patches, wd, bd, wt, bt)

    down = down_flat[:M].reshape(n, ho, wo, cout)
    tidy = tidy_flat[:M, :n_tidy].reshape(n, ho, wo, n_tidy)
    return down, tidy


# ----------------------------------------------------------------------------
# ProposalNet parameters + forward
# ----------------------------------------------------------------------------
def init_proposal_net_params(key):
    """Deterministic init, PyTorch-like uniform(-1/sqrt(fan_in), 1/sqrt(fan_in))."""
    specs = {
        "down1": (3, 3, 2048, 128),
        "down2": (3, 3, 128, 128),
        "down3": (3, 3, 128, 128),
        "tidy1": (1, 1, 128, 6),
        "tidy2": (1, 1, 128, 6),
        "tidy3": (1, 1, 128, 9),
    }
    params = {}
    for name, shape in specs.items():
        key, kw_key, kb_key = jax.random.split(key, 3)
        kh, kwid, cin, cout = shape
        fan_in = kh * kwid * cin
        bound = 1.0 / jnp.sqrt(float(fan_in))
        w = jax.random.uniform(kw_key, shape, jnp.float32, -bound, bound)
        b = jax.random.uniform(kb_key, (cout,), jnp.float32, -bound, bound)
        params[name] = (w, b)
    return params


def proposal_net_forward(params, x_nchw):
    """x_nchw: (N, 2048, H, W) f32 -> (N, 6*H*W + 6*(H/2)*(W/2) + 9*(H/4)*(W/4))"""
    batch = x_nchw.shape[0]
    x = jnp.transpose(x_nchw, (0, 2, 3, 1))  # NCHW -> NHWC

    d1, t1 = fused_conv_block(x, *params["down1"], *params["tidy1"],
                              stride=1, pad=1)
    d2, t2 = fused_conv_block(d1, *params["down2"], *params["tidy2"],
                              stride=2, pad=1)
    _d3, t3 = fused_conv_block(d2, *params["down3"], *params["tidy3"],
                               stride=2, pad=1)

    # Match PyTorch's view(batch, -1) on NCHW tensors: flatten in (C, H, W) order.
    def flat_nchw(t_nhwc):
        return jnp.transpose(t_nhwc, (0, 3, 1, 2)).reshape(batch, -1)

    return jnp.concatenate([flat_nchw(t1), flat_nchw(t2), flat_nchw(t3)], axis=1)


# ----------------------------------------------------------------------------
# Pure-JAX f32 reference (correctness sanity check)
# ----------------------------------------------------------------------------
def _ref_conv(x_nhwc, w_hwio, bias, stride, pad):
    out = jax.lax.conv_general_dilated(
        x_nhwc, w_hwio, window_strides=(stride, stride),
        padding=[(pad, pad), (pad, pad)],
        dimension_numbers=("NHWC", "HWIO", "NHWC"),
    )
    return out + bias.reshape(1, 1, 1, -1)


def proposal_net_reference(params, x_nchw):
    batch = x_nchw.shape[0]
    x = jnp.transpose(x_nchw, (0, 2, 3, 1))
    d1 = jax.nn.relu(_ref_conv(x, *params["down1"], 1, 1))
    d2 = jax.nn.relu(_ref_conv(d1, *params["down2"], 2, 1))
    d3 = jax.nn.relu(_ref_conv(d2, *params["down3"], 2, 1))
    t1 = _ref_conv(d1, *params["tidy1"], 1, 0)
    t2 = _ref_conv(d2, *params["tidy2"], 1, 0)
    t3 = _ref_conv(d3, *params["tidy3"], 1, 0)

    def flat_nchw(t):
        return jnp.transpose(t, (0, 3, 1, 2)).reshape(batch, -1)

    return jnp.concatenate([flat_nchw(t1), flat_nchw(t2), flat_nchw(t3)], axis=1)


# ----------------------------------------------------------------------------
if __name__ == "__main__":
    key = jax.random.PRNGKey(0)
    pkey, xkey = jax.random.split(key)

    params = init_proposal_net_params(pkey)

    # Small spatial size consistent with the module (channels fixed at 2048
    # by the module definition): N=2, C=2048, H=W=8  ->  output (2, 516).
    x = jax.random.normal(xkey, (2, 2048, 8, 8), dtype=jnp.float32)

    out = proposal_net_forward(params, x)
    out = jax.block_until_ready(out)

    assert out.shape == (2, 6 * 8 * 8 + 6 * 4 * 4 + 9 * 2 * 2), out.shape

    ref = jax.block_until_ready(proposal_net_reference(params, x))
    # MXU inputs are bf16 (f32 accumulation), so allow a slightly looser
    # tolerance vs. the pure-f32 reference over the K=18432 reduction.
    assert jnp.allclose(out, ref, atol=5e-2, rtol=5e-2), float(
        jnp.max(jnp.abs(out - ref))
    )

    print("KERNEL_OK")
</pallas_src>

<mosaic_0001>
module attributes {stable_mosaic.version = 11 : i64} {
  func.func @_fused_down_tidy_kernel(%arg0: i32, %arg1: i32, %arg2: memref<128x2048xbf16, #tpu.memory_space<vmem>>, %arg3: memref<2048x128xbf16, #tpu.memory_space<vmem>>, %arg4: memref<1x128xf32, #tpu.memory_space<vmem>>, %arg5: memref<128x128xbf16, #tpu.memory_space<vmem>>, %arg6: memref<1x128xf32, #tpu.memory_space<vmem>>, %arg7: memref<128x128xf32, #tpu.memory_space<vmem>>, %arg8: memref<128x128xf32, #tpu.memory_space<vmem>>) attributes {dimension_semantics = [#tpu.dimension_semantics<parallel>, #tpu.dimension_semantics<arbitrary>], iteration_bounds = array<i64: 1, 9>, scalar_prefetch = 0 : i64, scratch_operands = 0 : i64, tpu.core_type = #tpu.core_type<tc>, window_params = [{transform_indices = @transform_0, window_bounds = array<i64: 128, 2048>}, {transform_indices = @transform_1, window_bounds = array<i64: 2048, 128>}, {pipeline_mode = #tpu.pipeline_mode<synchronous>, transform_indices = @transform_2, window_bounds = array<i64: 1, 128>}, {pipeline_mode = #tpu.pipeline_mode<synchronous>, transform_indices = @transform_3, window_bounds = array<i64: 128, 128>}, {pipeline_mode = #tpu.pipeline_mode<synchronous>, transform_indices = @transform_4, window_bounds = array<i64: 1, 128>}, {transform_indices = @transform_5, window_bounds = array<i64: 128, 128>}, {transform_indices = @transform_6, window_bounds = array<i64: 128, 128>}]} {
    %c0_i32 = arith.constant 0 : i32
    %0 = arith.cmpi eq, %arg1, %c0_i32 : i32
    %1 = arith.extui %0 : i1 to i32
    %c0_i32_0 = arith.constant 0 : i32
    %2 = arith.cmpi ne, %1, %c0_i32_0 : i32
    scf.if %2 {
      %cst_9 = arith.constant 0.000000e+00 : f32
      %12 = vector.broadcast %cst_9 : f32 to vector<128x128xf32>
      %c0_10 = arith.constant 0 : index
      %c0_11 = arith.constant 0 : index
      %13 = vector.load %arg7[%c0_10, %c0_11] : memref<128x128xf32, #tpu.memory_space<vmem>>, vector<128x128xf32>
      tpu.vector_store %arg7[%c0_10, %c0_11], %12 {strides = array<i32>} : memref<128x128xf32, #tpu.memory_space<vmem>>, vector<128x128xf32>,
    } else {
    }
    %c0 = arith.constant 0 : index
    %c0_1 = arith.constant 0 : index
    %3 = vector.load %arg7[%c0, %c0_1] : memref<128x128xf32, #tpu.memory_space<vmem>>, vector<128x128xf32>
    %c0_2 = arith.constant 0 : index
    %c0_3 = arith.constant 0 : index
    %4 = vector.load %arg2[%c0_2, %c0_3] : memref<128x2048xbf16, #tpu.memory_space<vmem>>, vector<128x2048xbf16>
    %c0_4 = arith.constant 0 : index
    %c0_5 = arith.constant 0 : index
    %5 = vector.load %arg3[%c0_4, %c0_5] : memref<2048x128xbf16, #tpu.memory_space<vmem>>, vector<2048x128xbf16>
    %cst = arith.constant dense<0.000000e+00> : vector<128x128xf32>
    %6 = tpu.matmul %4, %5, %cst {dimension_numbers = #tpu.dot_dimension_numbers<[1], [0], [0], [1], [0, 0, 1, 1], [], []>} : vector<128x2048xbf16>, vector<2048x128xbf16>, vector<128x128xf32> -> vector<128x128xf32>
    %7 = arith.addf %3, %6 : vector<128x128xf32>
    %c0_6 = arith.constant 0 : index
    %c0_7 = arith.constant 0 : index
    %8 = vector.load %arg7[%c0_6, %c0_7] : memref<128x128xf32, #tpu.memory_space<vmem>>, vector<128x128xf32>
    tpu.vector_store %arg7[%c0_6, %c0_7], %7 {strides = array<i32>} : memref<128x128xf32, #tpu.memory_space<vmem>>, vector<128x128xf32>,
    %c8_i32 = arith.constant 8 : i32
    %9 = arith.cmpi eq, %arg1, %c8_i32 : i32
    %10 = arith.extui %9 : i1 to i32
    %c0_i32_8 = arith.constant 0 : i32
    %11 = arith.cmpi ne, %10, %c0_i32_8 : i32
    scf.if %11 {
      %c0_9 = arith.constant 0 : index
      %c0_10 = arith.constant 0 : index
      %12 = vector.load %arg7[%c0_9, %c0_10] : memref<128x128xf32, #tpu.memory_space<vmem>>, vector<128x128xf32>
      %c0_11 = arith.constant 0 : index
      %c0_12 = arith.constant 0 : index
      %13 = vector.load %arg4[%c0_11, %c0_12] : memref<1x128xf32, #tpu.memory_space<vmem>>, vector<1x128xf32>
      %14 = vector.broadcast %13 : vector<1x128xf32> to vector<128x128xf32>
      %15 = arith.addf %12, %14 : vector<128x128xf32>
      %cst_13 = arith.constant 0.000000e+00 : f32
      %16 = vector.broadcast %cst_13 : f32 to vector<128x128xf32>
      %17 = arith.maximumf %15, %16 : vector<128x128xf32>
      %c0_14 = arith.constant 0 : index
      %c0_15 = arith.constant 0 : index
      %18 = vector.load %arg7[%c0_14, %c0_15] : memref<128x128xf32, #tpu.memory_space<vmem>>, vector<128x128xf32>
      tpu.vector_store %arg7[%c0_14, %c0_15], %17 {strides = array<i32>} : memref<128x128xf32, #tpu.memory_space<vmem>>, vector<128x128xf32>,
      %19 = arith.truncf %17 : vector<128x128xf32> to vector<128x128xbf16>
      %c0_16 = arith.constant 0 : index
      %c0_17 = arith.constant 0 : index
      %20 = vector.load %arg5[%c0_16, %c0_17] : memref<128x128xbf16, #tpu.memory_space<vmem>>, vector<128x128xbf16>
      %cst_18 = arith.constant dense<0.000000e+00> : vector<128x128xf32>
      %21 = tpu.matmul %19, %20, %cst_18 {dimension_numbers = #tpu.dot_dimension_numbers<[1], [0], [0], [1], [0, 0, 1, 1], [], []>} : vector<128x128xbf16>, vector<128x128xbf16>, vector<128x128xf32> -> vector<128x128xf32>
      %c0_19 = arith.constant 0 : index
      %c0_20 = arith.constant 0 : index
      %22 = vector.load %arg6[%c0_19, %c0_20] : memref<1x128xf32, #tpu.memory_space<vmem>>, vector<1x128xf32>
      %23 = vector.broadcast %22 : vector<1x128xf32> to vector<128x128xf32>
      %24 = arith.addf %21, %23 : vector<128x128xf32>
      %c0_21 = arith.constant 0 : index
      %c0_22 = arith.constant 0 : index
      %25 = vector.load %arg8[%c0_21, %c0_22] : memref<128x128xf32, #tpu.memory_space<vmem>>, vector<128x128xf32>
      tpu.vector_store %arg8[%c0_21, %c0_22], %24 {strides = array<i32>} : memref<128x128xf32, #tpu.memory_space<vmem>>, vector<128x128xf32>,
    } else {
    }
    return
  }
  func.func @transform_0(%arg0: i32, %arg1: i32) -> (i32, i32) {
    %c0_i32 = arith.constant 0 : i32
    return %arg0, %arg1 : i32, i32
  }
  func.func @transform_1(%arg0: i32, %arg1: i32) -> (i32, i32) {
    %c0_i32 = arith.constant 0 : i32
    %c0_i32_0 = arith.constant 0 : i32
    return %arg1, %c0_i32 : i32, i32
  }
  func.func @transform_2(%arg0: i32, %arg1: i32) -> (i32, i32) {
    %c0_i32 = arith.constant 0 : i32
    %c0_i32_0 = arith.constant 0 : i32
    %c0_i32_1 = arith.constant 0 : i32
    return %c0_i32, %c0_i32_0 : i32, i32
  }
  func.func @transform_3(%arg0: i32, %arg1: i32) -> (i32, i32) {
    %c0_i32 = arith.constant 0 : i32
    %c0_i32_0 = arith.constant 0 : i32
    %c0_i32_1 = arith.constant 0 : i32
    return %c0_i32, %c0_i32_0 : i32, i32
  }
  func.func @transform_4(%arg0: i32, %arg1: i32) -> (i32, i32) {
    %c0_i32 = arith.constant 0 : i32
    %c0_i32_0 = arith.constant 0 : i32
    %c0_i32_1 = arith.constant 0 : i32
    return %c0_i32, %c0_i32_0 : i32, i32
  }
  func.func @transform_5(%arg0: i32, %arg1: i32) -> (i32, i32) {
    %c0_i32 = arith.constant 0 : i32
    %c0_i32_0 = arith.constant 0 : i32
    return %arg0, %c0_i32 : i32, i32
  }
  func.func @transform_6(%arg0: i32, %arg1: i32) -> (i32, i32) {
    %c0_i32 = arith.constant 0 : i32
    %c0_i32_0 = arith.constant 0 : i32
    return %arg0, %c0_i32 : i32, i32
  }
}

</mosaic_0001>

<bundles_post_ra>
// kernel: tpu_custom_call.1
= control target key start
LH: loop header
LB: loop body
LE: loop exit
PB: predicated region body
PF: predicated region fallthrough
CT: control target
= control target key end

     0   :  { %s5601_s0 = inlined_call_operand.hbm [shape: bf16[128,18432], index: 0, kind: input, shape index: {}]   ;;  %s5602_s1 = inlined_call_operand.hbm [shape: bf16[18432,128], index: 1, kind: input, shape index: {}]   ;;  %s5603_s2 = inlined_call_operand.hbm [shape: f32[1,128], index: 2, kind: input, shape index: {}]   ;;  %s5604_s3 = inlined_call_operand.hbm [shape: bf16[128,128], index: 3, kind: input, shape index: {}]   ;;  %s5605_s4 = inlined_call_operand.hbm [shape: f32[1,128], index: 4, kind: input, shape index: {}]   ;;  %s5606_s5 = inlined_call_operand.hbm [shape: f32[128,128], index: 5, kind: output, shape index: {0}]   ;;  %s5607_s6 = inlined_call_operand.hbm [shape: f32[128,128], index: 6, kind: output, shape index: {1}]  }
   0x1   :  { %5613 = sst [smem:[#allocation20_spill]] %s5601_s0 }
   0x2   :  { %5614 = sst [smem:[#allocation21_spill]] %s5603_s2 }
   0x3   :  { %5615 = sst [smem:[#allocation22_spill]] %s5604_s3 }
   0x4   :  { %12 = vsyncpa [#allocation3], 0 }
   0x5   :  { %14 = vsyncpa [#allocation3 + $0x1], 0 }
   0x6   :  { %15 = vsyncpa [#allocation6], 0 }
   0x7   :  { %17 = vsyncpa [#allocation6 + $0x1], 0 }
   0x8   :  { %18 = vsyncpa [#allocation9], 0 }
   0x9   :  { %19 = vsyncpa [#allocation4], 0 }
   0xa   :  { %20 = vsyncpa [#allocation13], 0  ;;  %s4863_s21 = smov 0   ;;  %s4865_s22 = smov 0  }
   0xb   :  { %s4867_s23 = smov 0   ;;  %s4869_s24 = smov 0  }
   0xc   :  { %s4871_s25 = smov 0   ;;  %s4873_s26 = smov 0  }
   0xd LB: > { %s4892_s27 = sadd.s32 4294967295, %s4812_s26   ;;  %p54_p0 = scmp.ne.s32.totalorder %s4800_s23, %s4796_s22  ;;  %s4812_s26 = sphi %s4873_s26, %s26_s26   ;;  %s4808_s25 = sphi %s4871_s25, %s5637_s25   ;;  %s4804_s24 = sphi %s4869_s24, %s5636_s24   ;;  %s4800_s23 = sphi %s4867_s23, %s5635_s23   ;;  %s4796_s22 = sphi %s4865_s22, %s5634_s22   ;;  %s4792_s21 = sphi %s4863_s21, %s5633_s21  }
   0xe   : > { %p55_p1 = scmp.eq.s32.totalorder %s4812_s26, 0  ;;  %p60_p2 = scmp.ne.s32.totalorder %s4796_s22, %s4792_s21 }
   0xf   : > { %p5608_p3 = scmp.eq.s32.totalorder %s4892_s27, 0  ;;  %p3429_p5 = scmp.ge.s32.totalorder %s4812_s26, 1 }
  0x10   : > { %p56_p4 = por %p55_p1, %p54_p0  ;;  %p212_p7 = scmp.lt.s32.totalorder %s4812_s26, 10 }
  0x11   : > { %p4903_p6 = por %p5608_p3, %p60_p2  ;;  %s4814_s7 = smov [#allocation7]  }
  0x12   : > { %p4908_p8 = pnand %p3429_p5, %p212_p7  ;;  %s225_s8 = sshll.u32 %s4814_s7, 4  ;;  %s226_s8 = int_to_ptr.vmem [resolvable:$true] %s225_s8 }
  0x13   : > { %s5616_s29 = scalar_select %p4903_p6, 1, 0 }
  0x14   : > { %s5617_s30 = scalar_select %p4908_p8, 1, 0 }
  0x15   : > { %p4322_p9 = pneg %p4908_p8  ;;  %p4342_p10 = scmp.lt.s32.totalorder %s4812_s26, 9 }
  0x16   : > { %s4815_s11 = smov [#allocation8]   ;;  %s5620_s2 = sld [smem:[#allocation21_spill]] }
  0x17   : > { %p4917_p11 = pnand %p4322_p9, %p5608_p3  ;;  %p4921_p12 = pnand %p4342_p10, %p56_p4 }
  0x18   : > { %s235_s12 = sshll.u32 %s4815_s11, 4  ;;  %s236_s12 = int_to_ptr.vmem [resolvable:$true] %s235_s12 }
  0x19   : > { %s5619_s10 = scalar_select %p4921_p12, 1, 0 }
  0x1a   : > { %p4933_p0 = pneg %p4917_p11 }
  0x1c   : > { %s4546_s15 = scalar_lea.hbm %s5620_s2, 16 }
  0x1d   : > { %p4547_p13 = scmp.ne.s32.totalorder %s5620_s2, %s4546_s15  ;;  %p4553_p4 = scmp.lt.u32.totalorder %s4546_s15, %s5620_s2 }
  0x1f   : > { %p4549_p1 = pnand %p4933_p0, %p4547_p13 }
  0x21   : > { %p4550_p2 = pneg %p4549_p1 }
  0x23   : > { %p4555_p5 = pnand %p4553_p4, %p4550_p2 }
  0x25   : > { %4558 = shalt.err (!%p4555_p5)
}
  0x26   : > { %s4559_s21 = scalar_lea.vmem %s226_s8, 16  ;;  %s4566_s7 = scalar_lea.vmem %s226_s8, 32 }
  0x27   : > { %p4560_p7 = scmp.ne.s32.totalorder %s226_s8, %s4559_s21  ;;  %p4567_p3 = scmp.lt.s32.totalorder %s226_s8, %s226_s8 }
  0x28   : > { %p4568_p6 = scmp.lt.s32.totalorder %s4566_s7, %s4559_s21 }
  0x29   : > { %p4562_p9 = pnand %p4560_p7, %p4933_p0 }
  0x2a   : > { %p4569_p8 = por %p4568_p6, %p4567_p3 }
  0x2b   : > { %p4563_p10 = pneg %p4562_p9 }
  0x2d   : > { %p4570_p12 = pnand %p4569_p8, %p4563_p10 }
  0x2f   : > { %4573 = shalt.err (!%p4570_p12)
}
  0x30   : > { %4325 = dma.hbm_to_vmem [thread:$0]  (!%p4917_p11), %s5620_s2, 16, %s226_s8, [#allocation6]  }
  0x31   : > { %s5622_s3 = sld [smem:[#allocation22_spill]] }
  0x37   : > { %s4574_s16 = scalar_lea.hbm %s5622_s3, 1024 }
  0x38   : > { %p4575_p13 = scmp.ne.s32.totalorder %s5622_s3, %s4574_s16  ;;  %p4581_p8 = scmp.lt.u32.totalorder %s4574_s16, %s5622_s3 }
  0x3a   : > { %p4577_p3 = pnand %p4575_p13, %p4933_p0 }
  0x3c   : > { %p4578_p6 = pneg %p4577_p3 }
  0x3e   : > { %p4583_p12 = pnand %p4581_p8, %p4578_p6 }
  0x40   : > { %4586 = shalt.err (!%p4583_p12)
}
  0x41   : > { %s4587_s7 = scalar_lea.vmem %s236_s12, 1024  ;;  %p4595_p5 = scmp.lt.s32.totalorder %s236_s12, %s236_s12 }
  0x42   : > { %p4588_p1 = scmp.ne.s32.totalorder %s236_s12, %s4587_s7  ;;  %p4596_p7 = scmp.lt.s32.totalorder %s4587_s7, %s4587_s7 }
  0x44   : > { %p4590_p2 = pnand %p4588_p1, %p4933_p0  ;;  %p4597_p9 = por %p4596_p7, %p4595_p5 }
  0x46   : > { %p4591_p4 = pneg %p4590_p2 }
  0x48   : > { %p4598_p10 = pnand %p4597_p9, %p4591_p4 }
  0x4a   : > { %4601 = shalt.err (!%p4598_p10)
}
  0x4b   : > { %s4816_s8 = smov 64   ;;  %s5612_s11 = smov 4  }
  0x4c   : > { %4328 = dma.hbm_to_vmem [thread:$0]  (!%p4917_p11), %s5622_s3, 1024, %s236_s12, [#allocation9], %s4816_s8, %s4816_s8, %s5612_s11  }
  0x4d   : > { %s4818_s15 = smov [#allocation10]   ;;  %s4602_s20 = scalar_lea.hbm %s5605_s4, 16 }
  0x4e   : > { %s249_s16 = sshll.u32 %s4818_s15, 4  ;;  %p4603_p13 = scmp.ne.s32.totalorder %s5605_s4, %s4602_s20  ;;  %s250_s16 = int_to_ptr.vmem [resolvable:$true] %s249_s16 }
  0x4f   : > { %p4609_p8 = scmp.lt.u32.totalorder %s4602_s20, %s5605_s4 }
  0x50   : > { %p4605_p3 = pnand %p4603_p13, %p4933_p0 }
  0x52   : > { %p4606_p6 = pneg %p4605_p3 }
  0x54   : > { %p4611_p12 = pnand %p4609_p8, %p4606_p6 }
  0x56   : > { %4614 = shalt.err (!%p4611_p12)
}
  0x57   : > { %s4615_s12 = scalar_lea.vmem %s250_s16, 16  ;;  %s4622_s13 = scalar_lea.vmem %s250_s16, 32 }
  0x58   : > { %p4616_p1 = scmp.ne.s32.totalorder %s250_s16, %s4615_s12  ;;  %p4623_p5 = scmp.lt.s32.totalorder %s250_s16, %s250_s16 }
  0x59   : > { %p4624_p7 = scmp.lt.s32.totalorder %s4622_s13, %s4615_s12 }
  0x5a   : > { %p4618_p2 = pnand %p4616_p1, %p4933_p0 }
  0x5b   : > { %p4625_p9 = por %p4624_p7, %p4623_p5 }
  0x5c   : > { %p4619_p4 = pneg %p4618_p2 }
  0x5e   : > { %p4626_p10 = pnand %p4625_p9, %p4619_p4 }
  0x60   : > { %4629 = shalt.err (!%p4626_p10)
}
  0x61   : > { %4331 = dma.hbm_to_vmem [thread:$0]  (!%p4917_p11), %s5605_s4, 16, %s250_s16, [#allocation9]  }
  0x62   : > { %s35_s2 = sadd.s32 1, %s4808_s25  ;;  %s260_s28 = sand.u32 1, %s4800_s23  }
  0x63   : > { %p36_p0 = scmp.ge.s32.totalorder %s35_s2, 9  ;;  %s4990_s18 = sshll.u32 %s260_s28, 10 }
  0x64   : > { %s3720_s17 = sshll.u32 %s4808_s25, 10  ;;  %s5623_s0 = sld [smem:[#allocation20_spill]] }
  0x65   : > { %s5639_s2 = smov (%p36_p0, %s35_s2), 0  ;;  %s264_s21 = scalar_lea.vmem [#allocation2], %s4990_s18 }
  0x66   : > { %s43_s16 = ssub.s32 %s4808_s25, %s5639_s2  ;;  %s274_s7 = sshll.u32 %s264_s21, 4  ;;  %s5003_s7 = int_to_ptr.vmem [resolvable:$true] %s274_s7 }
  0x67   : > { %p45_p11 = scmp.eq.s32.totalorder %s43_s16, 0  ;;  %s5624_s12 = sadd.s32 1, %s4800_s23 }
  0x68   : > { %s5010_s14 = scalar_lea.sflag [#allocation3], %s260_s28  ;;  %p5625_p3 = scmp.ne.s32.totalorder %s5619_s10, 0 }
  0x69   : > { %s5008_s13 = scalar_select %p45_p11, %s4800_s23, %s5624_s12  }
  0x6a   : > { %s4998_s20 = scalar_lea.hbm %s5623_s0, %s3720_s17  ;;  %p4632_p6 = pneg %p5625_p3 }
  0x6b   : > { %s4630_s15 = scalar_lea.hbm %s4998_s20, 16384  ;;  %s4635_s19 = scalar_lea.hbm %s5623_s0, 147456 }
  0x6c   : > { %p4631_p13 = scmp.ne.s32.totalorder %s4998_s20, %s4630_s15  ;;  %p4636_p1 = scmp.lt.u32.totalorder %s4998_s20, %s5623_s0 }
  0x6d   : > { %p4637_p2 = scmp.lt.u32.totalorder %s4635_s19, %s4630_s15  ;;  %p4639_p5 = scmp.lt.u32.totalorder %s4630_s15, %s4998_s20 }
  0x6e   : > { %p4633_p8 = pnand %p4632_p6, %p4631_p13 }
  0x6f   : > { %p4638_p4 = por %p4637_p2, %p4636_p1 }
  0x70   : > { %p4634_p12 = pneg %p4633_p8 }
  0x71   : > { %p4640_p7 = por %p4639_p5, %p4638_p4 }
  0x73   : > { %p4641_p9 = pnand %p4640_p7, %p4634_p12 }
  0x75   : > { %4644 = shalt.err (!%p4641_p9)
}
  0x76   : > { %s4645_s28 = scalar_lea.vmem %s5003_s7, 16384  ;;  %s4819_s12 = smov [#allocation2]  }
  0x77   : > { %p4646_p10 = scmp.ne.s32.totalorder %s5003_s7, %s4645_s28  ;;  %s4650_s17 = sshll.u32 %s4819_s12, 4  ;;  %s4651_s17 = int_to_ptr.vmem [resolvable:$false] %s4650_s17 }
  0x78   : > { %s4652_s9 = scalar_lea.vmem %s4651_s17, 32768  ;;  %p4653_p13 = scmp.lt.s32.totalorder %s5003_s7, %s4651_s17 }
  0x79   : > { %p4648_p0 = pnand %p4646_p10, %p4632_p6  ;;  %p4654_p8 = scmp.lt.s32.totalorder %s4652_s9, %s4645_s28 }
  0x7b   : > { %p4649_p11 = pneg %p4648_p0  ;;  %p4655_p1 = por %p4654_p8, %p4653_p13 }
  0x7d   : > { %p4656_p2 = pnand %p4655_p1, %p4649_p11 }
  0x7f   : > { %4659 = shalt.err (!%p4656_p2)
}
  0x80   : > { %s4820_s15 = smov 9216   ;;  %s4821_s19 = smov 1024  }
  0x81   : > { %4335 = dma.hbm_to_vmem [thread:$0]  (!%p5625_p3), %s4998_s20, 16384, %s5003_s7, %s5010_s14, %s4820_s15, %s4821_s19, %s4816_s8  }
  0x82   : > { %s284_s16 = sand.u32 1, %s4812_s26   ;;  %s3721_s21 = sshll.u32 %s4808_s25, 14 }
  0x83   : > { %s5044_s17 = scalar_lea.hbm %s5602_s1, %s3721_s21  ;;  %s288_s9 = scalar_lea.vmem [#allocation5], %s4990_s18 }
  0x84   : > { %s295_s11 = sshll.u32 %s288_s9, 4  ;;  %s5049_s0 = scalar_lea.sflag [#allocation6], %s284_s16  ;;  %s5047_s11 = int_to_ptr.vmem [resolvable:$true] %s295_s11 }
  0x85   : > { %s4660_s3 = scalar_lea.hbm %s5044_s17, 16384  ;;  %s4665_s14 = scalar_lea.hbm %s5602_s1, 147456 }
  0x86   : > { %p4661_p12 = scmp.ne.s32.totalorder %s5044_s17, %s4660_s3  ;;  %p4666_p7 = scmp.lt.u32.totalorder %s5044_s17, %s5602_s1 }
  0x87   : > { %p4667_p9 = scmp.lt.u32.totalorder %s4665_s14, %s4660_s3  ;;  %p4669_p0 = scmp.lt.u32.totalorder %s4660_s3, %s5044_s17 }
  0x88   : > { %p4663_p4 = pnand %p4661_p12, %p4632_p6 }
  0x89   : > { %p4668_p10 = por %p4667_p9, %p4666_p7 }
  0x8a   : > { %p4664_p5 = pneg %p4663_p4 }
  0x8b   : > { %p4670_p11 = por %p4669_p0, %p4668_p10 }
  0x8d   : > { %p4671_p13 = pnand %p4670_p11, %p4664_p5 }
  0x8f   : > { %4674 = shalt.err (!%p4671_p13)
}
  0x90   : > { %s4675_s18 = scalar_lea.vmem %s5047_s11, 16384  ;;  %s4822_s16 = smov [#allocation5]  }
  0x91   : > { %p4676_p8 = scmp.ne.s32.totalorder %s5047_s11, %s4675_s18  ;;  %s4680_s21 = sshll.u32 %s4822_s16, 4  ;;  %s4681_s21 = int_to_ptr.vmem [resolvable:$false] %s4680_s21 }
  0x92   : > { %s4682_s12 = scalar_lea.vmem %s4681_s21, 32768  ;;  %p4683_p12 = scmp.lt.s32.totalorder %s5047_s11, %s4681_s21 }
  0x93   : > { %p4678_p1 = pnand %p4676_p8, %p4632_p6  ;;  %p4684_p4 = scmp.lt.s32.totalorder %s4682_s12, %s4675_s18 }
  0x95   : > { %p4679_p2 = pneg %p4678_p1  ;;  %p4685_p7 = por %p4684_p4, %p4683_p12 }
  0x97   : > { %p4686_p9 = pnand %p4685_p7, %p4679_p2 }
  0x99   : > { %4689 = shalt.err (!%p4686_p9)
}
  0x9a   : > { %s5626_s3 = smov 4   ;;  %p5627_p6 = scmp.ne.s32.totalorder %s5617_s30, 0 }
  0x9b   : > { %4338 = dma.hbm_to_vmem [thread:$0]  (!%p5625_p3), %s5044_s17, 16384, %s5047_s11, %s5049_s0, %s4816_s8, %s4816_s8, %s5626_s3  }
  0x9c   : > { %307 = sbr.rel (%p5627_p6) target bundleno = 982 (0x3d6), region = 40  ;;  %s309_s28 = sand.u32 (!%p5627_p6), 1, %s4796_s22  }
  0x9d   : > { %s3441_s9 = sshll.u32 (!%p5627_p6), %s309_s28, 10  ;;  %s310_s20 = scalar_lea.sflag (!%p5627_p6), [#allocation3], %s309_s28 }
  0x9e   : > { %s5081_s7 = scalar_lea.vmem (!%p5627_p6), [#allocation2], %s3441_s9  ;;  %p5628_p5 = scmp.ne.s32.totalorder (!%p5627_p6), %s5616_s29, 0 }
  0xa3   : > { %4767 = dma.done.wait (%p5628_p5), %s310_s20, 16384  }
  0xa4   : > { %4769 = vsyncadd (%p5628_p5), %s310_s20, 4294950912  ;;  %s318_s10 = sand.u32 1, %s4892_s27   ;;  %s5088_s0 = scalar_lea.vmem [#allocation5], %s3441_s9 }
  0xa5   : > { %s319_s14 = scalar_lea.sflag [#allocation6], %s318_s10 }
  0xa6   : > { %4771 = dma.done.wait (%p5628_p5), %s319_s14, 16384  }
  0xa7   : > { %4773 = vsyncadd (%p5628_p5), %s319_s14, 4294950912  ;;  %p5629_p3 = scmp.eq.s32.totalorder %s4892_s27, 0 }
  0xa9   : > { %4775 = dma.done.wait (%p5629_p3), [#allocation6], 16   ;;  %p5630_p10 = pmov %p5629_p3 }
  0xaa   : > { %p5631_p0 = pmov %p5629_p3 }
  0xab   : > { %4777 = vsyncadd (%p5630_p10), [#allocation6], 4294967280 }
  0xac   : > { %4779 = dma.done.wait (%p5631_p0), [#allocation9], 1040   ;;  %p5632_p11 = pmov %p5631_p0 }
  0xad   : > { %p3446_p13 = scmp.ne.s32.totalorder %s4804_s24, 0 }
  0xae   : > { %4781 = vsyncadd (%p5632_p11), [#allocation9], 4294966256  ;;  %v4823_v0 = vmov (!%p3446_p13), 0.0  }
  0xaf   : > { %372 = sbr.rel (%p3446_p13) target bundleno = 183 (0xb7), region = 64  ;;  %373 = vst [vmem:[#allocation11] sm:$0xff] (!%p3446_p13), %v4823_v0  ;;  %374 = vst [vmem:[#allocation11 + $0x8] sm:$0xff] (!%p3446_p13), %v4823_v0 }
  0xb0   : > { %375 = vst [vmem:[#allocation11 + $0x10] sm:$0xff] (!%p3446_p13), %v4823_v0  ;;  %376 = vst [vmem:[#allocation11 + $0x18] sm:$0xff] (!%p3446_p13), %v4823_v0 }
  0xb1   : > { %377 = vst [vmem:[#allocation11 + $0x20] sm:$0xff] (!%p3446_p13), %v4823_v0  ;;  %378 = vst [vmem:[#allocation11 + $0x28] sm:$0xff] (!%p3446_p13), %v4823_v0 }
  0xb2   : > { %379 = vst [vmem:[#allocation11 + $0x30] sm:$0xff] (!%p3446_p13), %v4823_v0  ;;  %380 = vst [vmem:[#allocation11 + $0x38] sm:$0xff] (!%p3446_p13), %v4823_v0 }
  0xb3   : > { %381 = vst [vmem:[#allocation11 + $0x40] sm:$0xff] (!%p3446_p13), %v4823_v0  ;;  %382 = vst [vmem:[#allocation11 + $0x48] sm:$0xff] (!%p3446_p13), %v4823_v0 }
  0xb4   : > { %383 = vst [vmem:[#allocation11 + $0x50] sm:$0xff] (!%p3446_p13), %v4823_v0  ;;  %384 = vst [vmem:[#allocation11 + $0x58] sm:$0xff] (!%p3446_p13), %v4823_v0 }
  0xb5   : > { %385 = vst [vmem:[#allocation11 + $0x60] sm:$0xff] (!%p3446_p13), %v4823_v0  ;;  %386 = vst [vmem:[#allocation11 + $0x68] sm:$0xff] (!%p3446_p13), %v4823_v0 }
  0xb6   : > { %387 = vst [vmem:[#allocation11 + $0x70] sm:$0xff] %v4823_v0  ;;  %388 = vst [vmem:[#allocation11 + $0x78] sm:$0xff] %v4823_v0 }
  0xb7 PF: > { %v4410_v1 = vld [vmem:[%s5088_s0 + $0x40] sm:$0xff]   ;;  %v4414_v5 = vld [vmem:[%s5088_s0 + $0x48] sm:$0xff]   ;;  %v4418_v9 = vld [vmem:[%s5088_s0 + $0x50] sm:$0xff]   ;;  %p3703_p8 = scmp.ne.s32.totalorder %s4804_s24, 8 }
  0xb8   : > { %v4411_v2 = vld [vmem:[%s5088_s0 + $0xc0] sm:$0xff]   ;;  %3722 = vmatprep.subr.bf16.mxu0 %v4410_v1  ;;  %v4415_v6 = vld [vmem:[%s5088_s0 + $0xc8] sm:$0xff]   ;;  %v4419_v10 = vld [vmem:[%s5088_s0 + $0xd0] sm:$0xff]  }
  0xb9   : > { %v4412_v3 = vld [vmem:[%s5088_s0] sm:$0xff]   ;;  %3786 = vmatprep.subr.bf16.mxu1 %v4411_v2  ;;  %v4416_v7 = vld [vmem:[%s5088_s0 + $0x8] sm:$0xff]   ;;  %v4420_v11 = vld [vmem:[%s5088_s0 + $0x10] sm:$0xff]  }
  0xba   : > { %v4413_v4 = vld [vmem:[%s5088_s0 + $0x80] sm:$0xff]   ;;  %3723 = vmatpush3.bf16.msra.mxu0 %v4412_v3  ;;  %v4417_v8 = vld [vmem:[%s5088_s0 + $0x88] sm:$0xff]   ;;  %v4421_v12 = vld [vmem:[%s5088_s0 + $0x90] sm:$0xff]  }
  0xbb   : > { %3787 = vmatpush3.bf16.msra.mxu1 %v4413_v4  ;;  %3724 = vmatprep.subr.bf16.mxu0 %v4414_v5  ;;  %v4422_v13 = vld [vmem:[%s5088_s0 + $0x58] sm:$0xff]   ;;  %v4426_v17 = vld [vmem:[%s5088_s0 + $0x60] sm:$0xff]   ;;  %v4430_v21 = vld [vmem:[%s5088_s0 + $0x68] sm:$0xff]  }
  0xbc   : > { %3788 = vmatprep.subr.bf16.mxu1 %v4415_v6  ;;  %v4423_v14 = vld [vmem:[%s5088_s0 + $0xd8] sm:$0xff]   ;;  %v4427_v18 = vld [vmem:[%s5088_s0 + $0xe0] sm:$0xff]   ;;  %v4431_v22 = vld [vmem:[%s5088_s0 + $0xe8] sm:$0xff]  }
  0xbd   : > { %v4424_v15 = vld [vmem:[%s5088_s0 + $0x18] sm:$0xff]   ;;  %v4428_v19 = vld [vmem:[%s5088_s0 + $0x20] sm:$0xff]   ;;  %v4432_v23 = vld [vmem:[%s5088_s0 + $0x28] sm:$0xff]  }
  0xbe   : > { %3725 = vmatpush3.bf16.msra.mxu0 %v4416_v7  ;;  %v4425_v16 = vld [vmem:[%s5088_s0 + $0x98] sm:$0xff]   ;;  %v4429_v20 = vld [vmem:[%s5088_s0 + $0xa0] sm:$0xff]   ;;  %v4433_v24 = vld [vmem:[%s5088_s0 + $0xa8] sm:$0xff]  }
  0xbf   : > { %3789 = vmatpush3.bf16.msra.mxu1 %v4417_v8  ;;  %3726 = vmatprep.subr.bf16.mxu0 %v4418_v9  ;;  %v4434_v25 = vld [vmem:[%s5088_s0 + $0x70] sm:$0xff]   ;;  %v4438_v29 = vld [vmem:[%s5088_s0 + $0x78] sm:$0xff]   ;;  %v405_v33 = vld [vmem:[%s5081_s7] sm:$0xff] }
  0xc0   : > { %3790 = vmatprep.subr.bf16.mxu1 %v4419_v10  ;;  %v4435_v26 = vld [vmem:[%s5088_s0 + $0xf0] sm:$0xff]   ;;  %v4439_v30 = vld [vmem:[%s5088_s0 + $0xf8] sm:$0xff]   ;;  %v413_v34 = vld [vmem:[%s5081_s7 + $0x40] sm:$0xff] }
  0xc1   : > { %v4436_v27 = vld [vmem:[%s5088_s0 + $0x30] sm:$0xff]   ;;  %v4440_v31 = vld [vmem:[%s5088_s0 + $0x38] sm:$0xff]   ;;  %v406_v35 = vld [vmem:[%s5081_s7 + $0x8] sm:$0xff]  ;;  %v3447_v36 = vcombine.low %v405_v33, %v413_v34  ;;  %v3448_v37 = vcombine.high %v405_v33, %v413_v34 }
  0xc2   : > { %3727 = vmatpush3.bf16.msra.mxu0 %v4420_v11  ;;  %v4437_v28 = vld [vmem:[%s5088_s0 + $0xb0] sm:$0xff]   ;;  %v4441_v32 = vld [vmem:[%s5088_s0 + $0xb8] sm:$0xff]   ;;  %v414_v38 = vld [vmem:[%s5081_s7 + $0x48] sm:$0xff] }
  0xc3   : > { %3791 = vmatpush3.bf16.msra.mxu1 %v4421_v12  ;;  %3728 = vmatprep.subr.bf16.mxu0 %v4422_v13  ;;  %v3449_v39 = vcombine.low %v406_v35, %v414_v38  ;;  %v3450_v40 = vcombine.high %v406_v35, %v414_v38  ;;  %v4442_v41 = vld [vmem:[%s5088_s0 + $0x140] sm:$0xff]   ;;  %v422_v48 = vld [vmem:[%s5081_s7 + $0x88] sm:$0xff]  ;;  %v4450_v63 = vld [vmem:[%s5088_s0 + $0x150] sm:$0xff]  }
  0xc4   : > { %3792 = vmatprep.subr.bf16.mxu1 %v4423_v14  ;;  %2229 = vmatprep.mubr.bf16.mxu0 %v3448_v37  ;;  %v4443_v42 = vld [vmem:[%s5088_s0 + $0x100] sm:$0xff]   ;;  %v430_v49 = vld [vmem:[%s5081_s7 + $0xc8] sm:$0xff]  ;;  %v4451_v0 = vld [vmem:[%s5088_s0 + $0x110] sm:$0xff]  }
  0xc5   : > { %2326 = vmatprep.mubr.bf16.mxu1 %v3450_v40  ;;  %v4444_v43 = vld [vmem:[%s5088_s0 + $0x1c0] sm:$0xff]   ;;  %v3466_v50 = vcombine.high %v422_v48, %v430_v49  ;;  %v4446_v51 = vld [vmem:[%s5088_s0 + $0x148] sm:$0xff]   ;;  %v3465_v54 = vcombine.low %v422_v48, %v430_v49  ;;  %v4452_v1 = vld [vmem:[%s5088_s0 + $0x1d0] sm:$0xff]  }
  0xc6   : > { %3729 = vmatpush3.bf16.msra.mxu0 %v4424_v15  ;;  %v4445_v44 = vld [vmem:[%s5088_s0 + $0x180] sm:$0xff]   ;;  %v4447_v53 = vld [vmem:[%s5088_s0 + $0x108] sm:$0xff]   ;;  %v4453_v2 = vld [vmem:[%s5088_s0 + $0x190] sm:$0xff]  }
  0xc7   : > { %3793 = vmatpush3.bf16.msra.mxu1 %v4425_v16  ;;  %3730 = vmatprep.subr.bf16.mxu0 %v4426_v17  ;;  %v421_v45 = vld [vmem:[%s5081_s7 + $0x80] sm:$0xff]  ;;  %v4448_v55 = vld [vmem:[%s5088_s0 + $0x1c8] sm:$0xff]   ;;  %v4454_v11 = vld [vmem:[%s5088_s0 + $0x158] sm:$0xff]  }
  0xc8   : > { %3794 = vmatprep.subr.bf16.mxu1 %v4427_v18  ;;  %v429_v46 = vld [vmem:[%s5081_s7 + $0xc0] sm:$0xff]  ;;  %v4449_v56 = vld [vmem:[%s5088_s0 + $0x188] sm:$0xff]   ;;  %v4455_v12 = vld [vmem:[%s5088_s0 + $0x118] sm:$0xff]  }
  0xc9   : > { %v3464_v47 = vcombine.high %v421_v45, %v429_v46  ;;  %v3463_v52 = vcombine.low %v421_v45, %v429_v46  ;;  %v437_v57 = vld [vmem:[%s5081_s7 + $0x100] sm:$0xff]  ;;  %v438_v59 = vld [vmem:[%s5081_s7 + $0x108] sm:$0xff]  ;;  %v4456_v13 = vld [vmem:[%s5088_s0 + $0x1d8] sm:$0xff]  }
  0xca   : > { %3731 = vmatpush3.bf16.msra.mxu0 %v4428_v19  ;;  %v445_v58 = vld [vmem:[%s5081_s7 + $0x140] sm:$0xff]  ;;  %v446_v60 = vld [vmem:[%s5081_s7 + $0x148] sm:$0xff]  ;;  %v4457_v14 = vld [vmem:[%s5088_s0 + $0x198] sm:$0xff]  }
  0xcb   : > { %3795 = vmatpush3.bf16.msra.mxu1 %v4429_v20  ;;  %3732 = vmatprep.subr.bf16.mxu0 %v4430_v21  ;;  %v3480_v61 = vcombine.high %v437_v57, %v445_v58  ;;  %v3482_v62 = vcombine.high %v438_v59, %v446_v60  ;;  %v3479_v3 = vcombine.low %v437_v57, %v445_v58  ;;  %v453_v4 = vld [vmem:[%s5081_s7 + $0x180] sm:$0xff]  ;;  %v454_v6 = vld [vmem:[%s5081_s7 + $0x188] sm:$0xff]  ;;  %v4467_v40 = vld [vmem:[%s5088_s0 + $0x130] sm:$0xff]  }
  0xcc   : > { %3796 = vmatprep.subr.bf16.mxu1 %v4431_v22  ;;  %v461_v5 = vld [vmem:[%s5081_s7 + $0x1c0] sm:$0xff]  ;;  %v3481_v7 = vcombine.low %v438_v59, %v446_v60  ;;  %v462_v9 = vld [vmem:[%s5081_s7 + $0x1c8] sm:$0xff]  ;;  %v4471_v49 = vld [vmem:[%s5088_s0 + $0x138] sm:$0xff]  }
  0xcd   : > { %v3496_v8 = vcombine.high %v453_v4, %v461_v5  ;;  %v3498_v10 = vcombine.high %v454_v6, %v462_v9  ;;  %v469_v15 = vld [vmem:[%s5081_s7 + $0x200] sm:$0xff]  ;;  %v470_v17 = vld [vmem:[%s5081_s7 + $0x208] sm:$0xff]  ;;  %v3495_v20 = vcombine.low %v453_v4, %v461_v5  ;;  %v3497_v22 = vcombine.low %v454_v6, %v462_v9  ;;  %v416_v4 = vld [vmem:[%s5081_s7 + $0x58] sm:$0xff] }
  0xce   : > { %3733 = vmatpush3.bf16.msra.mxu0 %v4432_v23  ;;  %v477_v16 = vld [vmem:[%s5081_s7 + $0x240] sm:$0xff]  ;;  %v478_v18 = vld [vmem:[%s5081_s7 + $0x248] sm:$0xff]  ;;  %v423_v9 = vld [vmem:[%s5081_s7 + $0x90] sm:$0xff] }
  0xcf   : > { %3797 = vmatpush3.bf16.msra.mxu1 %v4433_v24  ;;  %3734 = vmatprep.subr.bf16.mxu0 %v4434_v25  ;;  %v4458_v19 = vld [vmem:[%s5088_s0 + $0x160] sm:$0xff]   ;;  %v3512_v23 = vcombine.high %v469_v15, %v477_v16  ;;  %v3514_v25 = vcombine.high %v470_v17, %v478_v18  ;;  %v4464_v33 = vld [vmem:[%s5088_s0 + $0x1e8] sm:$0xff]   ;;  %v3511_v35 = vcombine.low %v469_v15, %v477_v16 }
  0xd0   : > { %3798 = vmatprep.subr.bf16.mxu1 %v4435_v26  ;;  %v4459_v21 = vld [vmem:[%s5088_s0 + $0x120] sm:$0xff]   ;;  %v4465_v34 = vld [vmem:[%s5088_s0 + $0x1a8] sm:$0xff]  }
  0xd1   : > { %v4460_v24 = vld [vmem:[%s5088_s0 + $0x1e0] sm:$0xff]   ;;  %v502_v45 = vld [vmem:[%s5081_s7 + $0x308] sm:$0xff] }
  0xd2   : > { %3735 = vmatpush3.bf16.msra.mxu0 %v4436_v27  ;;  %v4461_v26 = vld [vmem:[%s5088_s0 + $0x1a0] sm:$0xff]   ;;  %v510_v46 = vld [vmem:[%s5081_s7 + $0x348] sm:$0xff] }
  0xd3   : > { %3799 = vmatpush3.bf16.msra.mxu1 %v4437_v28  ;;  %3736 = vmatprep.subr.bf16.mxu0 %v4438_v29  ;;  %v485_v27 = vld [vmem:[%s5081_s7 + $0x280] sm:$0xff]  ;;  %v4462_v29 = vld [vmem:[%s5088_s0 + $0x168] sm:$0xff]  }
  0xd4   : > { %3800 = vmatprep.subr.bf16.mxu1 %v4439_v30  ;;  %v493_v28 = vld [vmem:[%s5081_s7 + $0x2c0] sm:$0xff]  ;;  %v486_v30 = vld [vmem:[%s5081_s7 + $0x288] sm:$0xff] }
  0xd5   : > { %v3528_v37 = vcombine.high %v485_v27, %v493_v28  ;;  %v3527_v48 = vcombine.low %v485_v27, %v493_v28  ;;  %v4474_v57 = vld [vmem:[%s5088_s0 + $0x240] sm:$0xff]   ;;  %v518_v58 = vld [vmem:[%s5081_s7 + $0x388] sm:$0xff]  ;;  %v4482_v27 = vld [vmem:[%s5088_s0 + $0x250] sm:$0xff]  }
  0xd6   : > { %3737 = vmatpush3.bf16.msra.mxu0 %v4440_v31  ;;  %v494_v31 = vld [vmem:[%s5081_s7 + $0x2c8] sm:$0xff]  ;;  %v4476_v59 = vld [vmem:[%s5088_s0 + $0x2c0] sm:$0xff]   ;;  %v4484_v28 = vld [vmem:[%s5088_s0 + $0x2d0] sm:$0xff]  }
  0xd7   : > { %3801 = vmatpush3.bf16.msra.mxu1 %v4441_v32  ;;  %3850 = vmatprep.subr.bf16.mxu0 %v4442_v41  ;;  %v4463_v32 = vld [vmem:[%s5088_s0 + $0x128] sm:$0xff]   ;;  %v3530_v38 = vcombine.high %v486_v30, %v494_v31  ;;  %v4468_v41 = vld [vmem:[%s5088_s0 + $0x1f0] sm:$0xff]   ;;  %v4477_v16 = vld [vmem:[%s5088_s0 + $0x280] sm:$0xff]  }
  0xd8   : > { %3914 = vmatprep.subr.bf16.mxu1 %v4444_v43  ;;  %v509_v43 = vld [vmem:[%s5081_s7 + $0x340] sm:$0xff]  ;;  %v526_v60 = vld [vmem:[%s5081_s7 + $0x3c8] sm:$0xff] }
  0xd9   : > { %2230 = vmatmul.mubr.bf16.vlgmr.msra.gmra.mrb[0].mxu0 %v3447_v36  ;;  %v3513_v36 = vcombine.low %v470_v17, %v478_v18  ;;  %v3561_v6 = vcombine.low %v518_v58, %v526_v60  ;;  %v4478_v18 = vld [vmem:[%s5088_s0 + $0x248] sm:$0xff]  }
  0xda   : > { %2327 = vmatmul.mubr.bf16.vlgmr.msra.gmra.mrb[0].mxu1 %v3449_v39  ;;  %3851 = vmatpush3.bf16.msra.mxu0 %v4443_v42  ;;  %v4466_v39 = vld [vmem:[%s5088_s0 + $0x170] sm:$0xff]   ;;  %v501_v42 = vld [vmem:[%s5081_s7 + $0x300] sm:$0xff] }
  0xdb   : > { %3915 = vmatpush3.bf16.msra.mxu1 %v4445_v44  ;;  %2237 = vmatprep.mubr.bf16.mxu0 %v3464_v47  ;;  %v4469_v44 = vld [vmem:[%s5088_s0 + $0x1b0] sm:$0xff]   ;;  %v4470_v47 = vld [vmem:[%s5088_s0 + $0x178] sm:$0xff]  }
  0xdc   : > { %2334 = vmatprep.mubr.bf16.mxu1 %v3466_v50  ;;  %3852 = vmatprep.subr.bf16.mxu0 %v4446_v51  ;;  %v3529_v50 = vcombine.low %v486_v30, %v494_v31  ;;  %v3544_v51 = vcombine.high %v501_v42, %v509_v43 }
  0xdd   : > { %3916 = vmatprep.subr.bf16.mxu1 %v4448_v55  ;;  %v517_v55 = vld [vmem:[%s5081_s7 + $0x380] sm:$0xff] }
  0xde   : > { %3853 = vmatpush3.bf16.msra.mxu0 %v4447_v53  ;;  %v3546_v53 = vcombine.high %v502_v45, %v510_v46 }
  0xdf   : > { %3917 = vmatpush3.bf16.msra.mxu1 %v4449_v56  ;;  %3854 = vmatprep.subr.bf16.mxu0 %v4450_v63  ;;  %v525_v56 = vld [vmem:[%s5081_s7 + $0x3c0] sm:$0xff] }
  0xe0   : > { %3918 = vmatprep.subr.bf16.mxu1 %v4452_v1  ;;  %v3560_v63 = vcombine.high %v517_v55, %v525_v56  ;;  %v407_v1 = vld [vmem:[%s5081_s7 + $0x10] sm:$0xff]  ;;  %v3559_v5 = vcombine.low %v517_v55, %v525_v56  ;;  %v472_v55 = vld [vmem:[%s5081_s7 + $0x218] sm:$0xff] }
  0xe1   : > { %2238 = vmatmul.mubr.bf16.gmra.mrb[4].mxu0 %v3463_v52  ;;  %v4472_v52 = vld [vmem:[%s5088_s0 + $0x1f8] sm:$0xff]  }
  0xe2   : > { %2335 = vmatmul.mubr.bf16.gmra.mrb[4].mxu1 %v3465_v54  ;;  %2245 = vmatprep.mubr.bf16.mxu0 %v3480_v61  ;;  %v4473_v54 = vld [vmem:[%s5088_s0 + $0x1b8] sm:$0xff]   ;;  %v3543_v61 = vcombine.low %v501_v42, %v509_v43  ;;  %v4490_v43 = vld [vmem:[%s5088_s0 + $0x260] sm:$0xff]  }
  0xe3   : > { %2342 = vmatprep.mubr.bf16.mxu1 %v3482_v62  ;;  %3855 = vmatpush3.bf16.msra.mxu0 %v4451_v0  ;;  %v3545_v62 = vcombine.low %v502_v45, %v510_v46  ;;  %v3562_v0 = vcombine.high %v518_v58, %v526_v60  ;;  %v4489_v42 = vld [vmem:[%s5088_s0 + $0x298] sm:$0xff]   ;;  %v4492_v45 = vld [vmem:[%s5088_s0 + $0x2e0] sm:$0xff]   ;;  %v4497_v58 = vld [vmem:[%s5088_s0 + $0x2a8] sm:$0xff]  }
  0xe4   : > { %3919 = vmatpush3.bf16.msra.mxu1 %v4453_v2  ;;  %3856 = vmatprep.subr.bf16.mxu0 %v4454_v11  ;;  %v415_v2 = vld [vmem:[%s5081_s7 + $0x50] sm:$0xff]  ;;  %v480_v56 = vld [vmem:[%s5081_s7 + $0x258] sm:$0xff] }
  0xe5   : > { %3920 = vmatprep.subr.bf16.mxu1 %v4456_v13  ;;  %v3451_v11 = vcombine.low %v407_v1, %v415_v2  ;;  %v424_v13 = vld [vmem:[%s5081_s7 + $0x98] sm:$0xff] }
  0xe7   : > { %3857 = vmatpush3.bf16.msra.mxu0 %v4455_v12  ;;  %v4475_v12 = vld [vmem:[%s5088_s0 + $0x200] sm:$0xff]  }
  0xe8   : > { %3921 = vmatpush3.bf16.msra.mxu1 %v4457_v14  ;;  %3858 = vmatprep.subr.bf16.mxu0 %v4458_v19  ;;  %v432_v14 = vld [vmem:[%s5081_s7 + $0xd8] sm:$0xff] }
  0xe9   : > { %2246 = vmatmul.mubr.bf16.gmra.mrb[8].mxu0 %v3479_v3  ;;  %3922 = vmatprep.subr.bf16.mxu1 %v4460_v24  ;;  %v408_v3 = vld [vmem:[%s5081_s7 + $0x18] sm:$0xff]  ;;  %v3470_v19 = vcombine.high %v424_v13, %v432_v14  ;;  %v447_v24 = vld [vmem:[%s5081_s7 + $0x150] sm:$0xff]  ;;  %v3469_v30 = vcombine.low %v424_v13, %v432_v14  ;;  %v4508_v13 = vld [vmem:[%s5088_s0 + $0x3c0] sm:$0xff]   ;;  %v3517_v14 = vcombine.low %v472_v55, %v480_v56 }
  0xea   : > { %2343 = vmatmul.mubr.bf16.gmra.mrb[8].mxu1 %v3481_v7  ;;  %2253 = vmatprep.mubr.bf16.mxu0 %v3496_v8  ;;  %v3452_v7 = vcombine.high %v407_v1, %v415_v2  ;;  %v3454_v8 = vcombine.high %v408_v3, %v416_v4  ;;  %v3453_v15 = vcombine.low %v408_v3, %v416_v4  ;;  %v4499_v1 = vld [vmem:[%s5088_s0 + $0x230] sm:$0xff]   ;;  %v4502_v3 = vld [vmem:[%s5088_s0 + $0x278] sm:$0xff]  }
  0xeb   : > { %2350 = vmatprep.mubr.bf16.mxu1 %v3498_v10  ;;  %3859 = vmatpush3.bf16.msra.mxu0 %v4459_v21  ;;  %v431_v10 = vld [vmem:[%s5081_s7 + $0xd0] sm:$0xff]  ;;  %v4480_v21 = vld [vmem:[%s5088_s0 + $0x2c8] sm:$0xff]  }
  0xec   : > { %3923 = vmatpush3.bf16.msra.mxu1 %v4461_v26  ;;  %3860 = vmatprep.subr.bf16.mxu0 %v4462_v29  ;;  %v3468_v17 = vcombine.high %v423_v9, %v431_v10  ;;  %v448_v26 = vld [vmem:[%s5081_s7 + $0x158] sm:$0xff]  ;;  %v3467_v29 = vcombine.low %v423_v9, %v431_v10  ;;  %v4501_v2 = vld [vmem:[%s5088_s0 + $0x2b0] sm:$0xff]  }
  0xed   : > { %3924 = vmatprep.subr.bf16.mxu1 %v4464_v33  ;;  %v4483_v33 = vld [vmem:[%s5088_s0 + $0x210] sm:$0xff]   ;;  %v4503_v9 = vld [vmem:[%s5088_s0 + $0x238] sm:$0xff]  }
  0xee   : > { %v487_v4 = vld [vmem:[%s5081_s7 + $0x290] sm:$0xff]  ;;  %v4505_v10 = vld [vmem:[%s5088_s0 + $0x2b8] sm:$0xff]  }
  0xef   : > { %3861 = vmatpush3.bf16.msra.mxu0 %v4463_v32 }
  0xf0   : > { %3925 = vmatpush3.bf16.msra.mxu1 %v4465_v34  ;;  %3862 = vmatprep.subr.bf16.mxu0 %v4466_v39  ;;  %v4485_v34 = vld [vmem:[%s5088_s0 + $0x290] sm:$0xff]   ;;  %v456_v39 = vld [vmem:[%s5081_s7 + $0x198] sm:$0xff] }
  0xf1   : > { %2254 = vmatmul.mubr.bf16.gmra.mrb[12].mxu0 %v3495_v20  ;;  %3926 = vmatprep.subr.bf16.mxu1 %v4468_v41  ;;  %v4479_v20 = vld [vmem:[%s5088_s0 + $0x208] sm:$0xff]   ;;  %v4487_v41 = vld [vmem:[%s5088_s0 + $0x218] sm:$0xff]  }
  0xf2   : > { %2351 = vmatmul.mubr.bf16.gmra.mrb[12].mxu1 %v3497_v22  ;;  %2261 = vmatprep.mubr.bf16.mxu0 %v3512_v23  ;;  %v4481_v22 = vld [vmem:[%s5088_s0 + $0x288] sm:$0xff]   ;;  %v439_v23 = vld [vmem:[%s5081_s7 + $0x110] sm:$0xff] }
  0xf3   : > { %2358 = vmatprep.mubr.bf16.mxu1 %v3514_v25  ;;  %3863 = vmatpush3.bf16.msra.mxu0 %v4467_v40  ;;  %v440_v25 = vld [vmem:[%s5081_s7 + $0x118] sm:$0xff]  ;;  %v3484_v31 = vcombine.high %v439_v23, %v447_v24 }
  0xf4   : > { %3927 = vmatpush3.bf16.msra.mxu1 %v4469_v44  ;;  %3864 = vmatprep.subr.bf16.mxu0 %v4470_v47  ;;  %v3486_v32 = vcombine.high %v440_v25, %v448_v26  ;;  %v464_v40 = vld [vmem:[%s5081_s7 + $0x1d8] sm:$0xff]  ;;  %v3483_v44 = vcombine.low %v439_v23, %v447_v24  ;;  %v3485_v46 = vcombine.low %v440_v25, %v448_v26  ;;  %v519_v25 = vld [vmem:[%s5081_s7 + $0x390] sm:$0xff] }
  0xf5   : > { %3928 = vmatprep.subr.bf16.mxu1 %v4472_v52  ;;  %v471_v52 = vld [vmem:[%s5081_s7 + $0x210] sm:$0xff] }
  0xf6   : > { %v527_v26 = vld [vmem:[%s5081_s7 + $0x3d0] sm:$0xff] }
  0xf7   : > { %3865 = vmatpush3.bf16.msra.mxu0 %v4471_v49  ;;  %v3502_v49 = vcombine.high %v456_v39, %v464_v40 }
  0xf8   : > { %3929 = vmatpush3.bf16.msra.mxu1 %v4473_v54  ;;  %3978 = vmatprep.subr.bf16.mxu0 %v4474_v57  ;;  %v479_v54 = vld [vmem:[%s5081_s7 + $0x250] sm:$0xff]  ;;  %v4495_v57 = vld [vmem:[%s5088_s0 + $0x228] sm:$0xff]  }
  0xf9   : > { %2262 = vmatmul.mubr.bf16.gmra.mrb[16].mxu0 %v3511_v35  ;;  %4042 = vmatprep.subr.bf16.mxu1 %v4476_v59  ;;  %v4486_v35 = vld [vmem:[%s5088_s0 + $0x258] sm:$0xff]   ;;  %v4498_v59 = vld [vmem:[%s5088_s0 + $0x270] sm:$0xff]  }
  0xfa   : > { %2359 = vmatmul.mubr.bf16.gmra.mrb[16].mxu1 %v3513_v36  ;;  %2269 = vmatprep.mubr.bf16.mxu0 %v3528_v37  ;;  %v455_v36 = vld [vmem:[%s5081_s7 + $0x190] sm:$0xff] }
  0xfb   : > { %2366 = vmatprep.mubr.bf16.mxu1 %v3530_v38  ;;  %v463_v37 = vld [vmem:[%s5081_s7 + $0x1d0] sm:$0xff]  ;;  %v4488_v38 = vld [vmem:[%s5088_s0 + $0x2d8] sm:$0xff]  }
  0xfc   : > { %v3500_v47 = vcombine.high %v455_v36, %v463_v37  ;;  %v3499_v60 = vcombine.low %v455_v36, %v463_v37  ;;  %v418_v36 = vld [vmem:[%s5081_s7 + $0x68] sm:$0xff]  ;;  %v3563_v37 = vcombine.low %v519_v25, %v527_v26 }
 0x101   : > { %2270 = vmatmul.mubr.bf16.gmra.mrb[20].mxu0 %v3527_v48  ;;  %v4491_v48 = vld [vmem:[%s5088_s0 + $0x220] sm:$0xff]  }
 0x102   : > { %2367 = vmatmul.mubr.bf16.gmra.mrb[20].mxu1 %v3529_v50  ;;  %2277 = vmatprep.mubr.bf16.mxu0 %v3544_v51  ;;  %v4493_v50 = vld [vmem:[%s5088_s0 + $0x2a0] sm:$0xff]   ;;  %v4494_v51 = vld [vmem:[%s5088_s0 + $0x268] sm:$0xff]  }
 0x103   : > { %2374 = vmatprep.mubr.bf16.mxu1 %v3546_v53  ;;  %v4496_v53 = vld [vmem:[%s5088_s0 + $0x2e8] sm:$0xff]  }
 0x109   : > { %2278 = vmatmul.mubr.bf16.gmra.mrb[24].mxu0 %v3543_v61  ;;  %v4500_v61 = vld [vmem:[%s5088_s0 + $0x2f0] sm:$0xff]  }
 0x10a   : > { %2375 = vmatmul.mubr.bf16.gmra.mrb[24].mxu1 %v3545_v62  ;;  %2285 = vmatprep.mubr.bf16.mxu0 %v3560_v63  ;;  %v3501_v62 = vcombine.low %v456_v39, %v464_v40  ;;  %v3516_v63 = vcombine.high %v471_v52, %v479_v54 }
 0x10b   : > { %2382 = vmatprep.mubr.bf16.mxu1 %v3562_v0  ;;  %v3518_v0 = vcombine.high %v472_v55, %v480_v56  ;;  %v441_v55 = vld [vmem:[%s5081_s7 + $0x120] sm:$0xff] }
 0x10c   : > { %v449_v56 = vld [vmem:[%s5081_s7 + $0x160] sm:$0xff] }
 0x111   : > { %2286 = vmatmul.mubr.bf16.gmra.mrb[28].mxu0 %v3559_v5  ;;  %v495_v5 = vld [vmem:[%s5081_s7 + $0x2d0] sm:$0xff] }
 0x112   : > { %2383 = vmatmul.mubr.bf16.gmra.mrb[28].mxu1 %v3561_v6  ;;  %2423 = vmatprep.mubr.bf16.mxu0 %v3452_v7  ;;  %v4504_v6 = vld [vmem:[%s5088_s0 + $0x2f8] sm:$0xff]  }
 0x113   : > { %2520 = vmatprep.mubr.bf16.mxu1 %v3454_v8  ;;  %v488_v7 = vld [vmem:[%s5081_s7 + $0x298] sm:$0xff] }
 0x114   : > { %v496_v8 = vld [vmem:[%s5081_s7 + $0x2d8] sm:$0xff] }
 0x119   : > { %2424 = vmatmul.mubr.bf16.vlgmr.msra.gmra.mrb[32].mxu0 %v3451_v11  ;;  %v4506_v11 = vld [vmem:[%s5088_s0 + $0x340] sm:$0xff]  }
 0x11a   : > { %2521 = vmatmul.mubr.bf16.vlgmr.msra.gmra.mrb[32].mxu1 %v3453_v15  ;;  %3979 = vmatpush3.bf16.msra.mxu0 %v4475_v12  ;;  %v3515_v12 = vcombine.low %v471_v52, %v479_v54  ;;  %v3532_v15 = vcombine.high %v487_v4, %v495_v5  ;;  %v4512_v52 = vld [vmem:[%s5088_s0 + $0x3c8] sm:$0xff]  }
 0x11b   : > { %4043 = vmatpush3.bf16.msra.mxu1 %v4477_v16  ;;  %2431 = vmatprep.mubr.bf16.mxu0 %v3468_v17  ;;  %v3534_v16 = vcombine.high %v488_v7, %v496_v8  ;;  %v503_v17 = vld [vmem:[%s5081_s7 + $0x310] sm:$0xff]  ;;  %v4513_v54 = vld [vmem:[%s5088_s0 + $0x388] sm:$0xff]  }
 0x11c   : > { %2528 = vmatprep.mubr.bf16.mxu1 %v3470_v19  ;;  %3980 = vmatprep.subr.bf16.mxu0 %v4478_v18  ;;  %v511_v18 = vld [vmem:[%s5081_s7 + $0x350] sm:$0xff]  ;;  %v504_v19 = vld [vmem:[%s5081_s7 + $0x318] sm:$0xff] }
 0x11d   : > { %4044 = vmatprep.subr.bf16.mxu1 %v4480_v21  ;;  %v3531_v21 = vcombine.low %v487_v4, %v495_v5  ;;  %v3548_v23 = vcombine.high %v503_v17, %v511_v18  ;;  %v4520_v4 = vld [vmem:[%s5088_s0 + $0x3d8] sm:$0xff]   ;;  %v457_v5 = vld [vmem:[%s5081_s7 + $0x1a0] sm:$0xff] }
 0x11e   : > { %3981 = vmatpush3.bf16.msra.mxu0 %v4479_v20  ;;  %v512_v20 = vld [vmem:[%s5081_s7 + $0x358] sm:$0xff] }
 0x11f   : > { %4045 = vmatpush3.bf16.msra.mxu1 %v4481_v22  ;;  %3982 = vmatprep.subr.bf16.mxu0 %v4482_v27  ;;  %v3533_v22 = vcombine.low %v488_v7, %v496_v8  ;;  %v3550_v24 = vcombine.high %v504_v19, %v512_v20  ;;  %v520_v27 = vld [vmem:[%s5081_s7 + $0x398] sm:$0xff]  ;;  %v458_v7 = vld [vmem:[%s5081_s7 + $0x1a8] sm:$0xff] }
 0x120   : > { %4046 = vmatprep.subr.bf16.mxu1 %v4484_v28  ;;  %v528_v28 = vld [vmem:[%s5081_s7 + $0x3d8] sm:$0xff] }
 0x121   : > { %2432 = vmatmul.mubr.bf16.gmra.mrb[36].mxu0 %v3467_v29  ;;  %v3547_v29 = vcombine.low %v503_v17, %v511_v18  ;;  %v4519_v8 = vld [vmem:[%s5088_s0 + $0x318] sm:$0xff]   ;;  %v4523_v17 = vld [vmem:[%s5088_s0 + $0x320] sm:$0xff]  }
 0x122   : > { %2529 = vmatmul.mubr.bf16.gmra.mrb[36].mxu1 %v3469_v30  ;;  %2439 = vmatprep.mubr.bf16.mxu0 %v3484_v31  ;;  %v3549_v30 = vcombine.low %v504_v19, %v512_v20  ;;  %v3564_v31 = vcombine.high %v519_v25, %v527_v26  ;;  %v4525_v18 = vld [vmem:[%s5088_s0 + $0x3a0] sm:$0xff]   ;;  %v4526_v19 = vld [vmem:[%s5088_s0 + $0x368] sm:$0xff]  }
 0x123   : > { %2536 = vmatprep.mubr.bf16.mxu1 %v3486_v32  ;;  %3983 = vmatpush3.bf16.msra.mxu0 %v4483_v33  ;;  %v3566_v32 = vcombine.high %v520_v27, %v528_v28  ;;  %v409_v33 = vld [vmem:[%s5081_s7 + $0x20] sm:$0xff]  ;;  %v4528_v20 = vld [vmem:[%s5088_s0 + $0x3e8] sm:$0xff]  }
 0x124   : > { %4047 = vmatpush3.bf16.msra.mxu1 %v4485_v34  ;;  %3984 = vmatprep.subr.bf16.mxu0 %v4486_v35  ;;  %v417_v34 = vld [vmem:[%s5081_s7 + $0x60] sm:$0xff]  ;;  %v410_v35 = vld [vmem:[%s5081_s7 + $0x28] sm:$0xff] }
 0x125   : > { %4048 = vmatprep.subr.bf16.mxu1 %v4488_v38  ;;  %v3565_v38 = vcombine.low %v520_v27, %v528_v28  ;;  %v3456_v39 = vcombine.high %v409_v33, %v417_v34  ;;  %v3458_v40 = vcombine.high %v410_v35, %v418_v36  ;;  %v482_v25 = vld [vmem:[%s5081_s7 + $0x268] sm:$0xff]  ;;  %v4530_v27 = vld [vmem:[%s5088_s0 + $0x370] sm:$0xff]  }
 0x126   : > { %v4529_v26 = vld [vmem:[%s5088_s0 + $0x3a8] sm:$0xff]  }
 0x127   : > { %3985 = vmatpush3.bf16.msra.mxu0 %v4487_v41  ;;  %v425_v41 = vld [vmem:[%s5081_s7 + $0xa0] sm:$0xff] }
 0x128   : > { %4049 = vmatpush3.bf16.msra.mxu1 %v4489_v42  ;;  %3986 = vmatprep.subr.bf16.mxu0 %v4490_v43  ;;  %v433_v42 = vld [vmem:[%s5081_s7 + $0xe0] sm:$0xff]  ;;  %v3455_v43 = vcombine.low %v409_v33, %v417_v34  ;;  %v4531_v33 = vld [vmem:[%s5088_s0 + $0x330] sm:$0xff]  }
 0x129   : > { %2440 = vmatmul.mubr.bf16.gmra.mrb[40].mxu0 %v3483_v44  ;;  %4050 = vmatprep.subr.bf16.mxu1 %v4492_v45  ;;  %v426_v44 = vld [vmem:[%s5081_s7 + $0xa8] sm:$0xff]  ;;  %v4533_v34 = vld [vmem:[%s5088_s0 + $0x3b0] sm:$0xff]  }
 0x12a   : > { %2537 = vmatmul.mubr.bf16.gmra.mrb[40].mxu1 %v3485_v46  ;;  %2447 = vmatprep.mubr.bf16.mxu0 %v3500_v47  ;;  %v434_v45 = vld [vmem:[%s5081_s7 + $0xe8] sm:$0xff]  ;;  %v3457_v46 = vcombine.low %v410_v35, %v418_v36  ;;  %v4507_v47 = vld [vmem:[%s5088_s0 + $0x300] sm:$0xff]   ;;  %v4534_v35 = vld [vmem:[%s5088_s0 + $0x378] sm:$0xff]  }
 0x12b   : > { %2544 = vmatprep.mubr.bf16.mxu1 %v3502_v49  ;;  %3987 = vmatpush3.bf16.msra.mxu0 %v4491_v48  ;;  %v4509_v48 = vld [vmem:[%s5088_s0 + $0x380] sm:$0xff]   ;;  %v3472_v49 = vcombine.high %v425_v41, %v433_v42  ;;  %v4536_v36 = vld [vmem:[%s5088_s0 + $0x3f8] sm:$0xff]  }
 0x12c   : > { %4051 = vmatpush3.bf16.msra.mxu1 %v4493_v50  ;;  %3988 = vmatprep.subr.bf16.mxu0 %v4494_v51  ;;  %v3474_v50 = vcombine.high %v426_v44, %v434_v45  ;;  %v4510_v51 = vld [vmem:[%s5088_s0 + $0x348] sm:$0xff]  }
 0x12d   : > { %4052 = vmatprep.subr.bf16.mxu1 %v4496_v53  ;;  %v4511_v53 = vld [vmem:[%s5088_s0 + $0x308] sm:$0xff]  }
 0x12f   : > { %3989 = vmatpush3.bf16.msra.mxu0 %v4495_v57  ;;  %v4514_v57 = vld [vmem:[%s5088_s0 + $0x350] sm:$0xff]  }
 0x130   : > { %4053 = vmatpush3.bf16.msra.mxu1 %v4497_v58  ;;  %3990 = vmatprep.subr.bf16.mxu0 %v4498_v59  ;;  %v442_v58 = vld [vmem:[%s5081_s7 + $0x128] sm:$0xff] }
 0x131   : > { %2448 = vmatmul.mubr.bf16.gmra.mrb[44].mxu0 %v3499_v60  ;;  %4054 = vmatprep.subr.bf16.mxu1 %v4500_v61  ;;  %v450_v59 = vld [vmem:[%s5081_s7 + $0x168] sm:$0xff]  ;;  %v4516_v60 = vld [vmem:[%s5088_s0 + $0x3d0] sm:$0xff]   ;;  %v3471_v61 = vcombine.low %v425_v41, %v433_v42  ;;  %v4537_v42 = vld [vmem:[%s5088_s0 + $0x3b8] sm:$0xff]  }
 0x132   : > { %2545 = vmatmul.mubr.bf16.gmra.mrb[44].mxu1 %v3501_v62  ;;  %2455 = vmatprep.mubr.bf16.mxu0 %v3516_v63  ;;  %v3473_v62 = vcombine.low %v426_v44, %v434_v45  ;;  %v3488_v63 = vcombine.high %v441_v55, %v449_v56  ;;  %v498_v41 = vld [vmem:[%s5081_s7 + $0x2e8] sm:$0xff] }
 0x133   : > { %2552 = vmatprep.mubr.bf16.mxu1 %v3518_v0  ;;  %3991 = vmatpush3.bf16.msra.mxu0 %v4499_v1  ;;  %v3490_v0 = vcombine.high %v442_v58, %v450_v59  ;;  %v4515_v1 = vld [vmem:[%s5088_s0 + $0x310] sm:$0xff]  }
 0x134   : > { %4055 = vmatpush3.bf16.msra.mxu1 %v4501_v2  ;;  %3992 = vmatprep.subr.bf16.mxu0 %v4502_v3  ;;  %v4517_v2 = vld [vmem:[%s5088_s0 + $0x390] sm:$0xff]   ;;  %v4518_v3 = vld [vmem:[%s5088_s0 + $0x358] sm:$0xff]  }
 0x135   : > { %4056 = vmatprep.subr.bf16.mxu1 %v4504_v6  ;;  %v465_v6 = vld [vmem:[%s5081_s7 + $0x1e0] sm:$0xff] }
 0x136   : > { %v3503_v28 = vcombine.low %v457_v5, %v465_v6 }
 0x137   : > { %3993 = vmatpush3.bf16.msra.mxu0 %v4503_v9  ;;  %v466_v9 = vld [vmem:[%s5081_s7 + $0x1e8] sm:$0xff] }
 0x138   : > { %4057 = vmatpush3.bf16.msra.mxu1 %v4505_v10  ;;  %4106 = vmatprep.subr.bf16.mxu0 %v4506_v11  ;;  %v4521_v10 = vld [vmem:[%s5088_s0 + $0x398] sm:$0xff]   ;;  %v4522_v11 = vld [vmem:[%s5088_s0 + $0x360] sm:$0xff]  }
 0x139   : > { %2456 = vmatmul.mubr.bf16.gmra.mrb[48].mxu0 %v3515_v12  ;;  %4170 = vmatprep.subr.bf16.mxu1 %v4508_v13  ;;  %v3487_v12 = vcombine.low %v441_v55, %v449_v56  ;;  %v4524_v13 = vld [vmem:[%s5088_s0 + $0x3e0] sm:$0xff]  }
 0x13a   : > { %2553 = vmatmul.mubr.bf16.gmra.mrb[48].mxu1 %v3517_v14  ;;  %2463 = vmatprep.mubr.bf16.mxu0 %v3532_v15  ;;  %v3489_v14 = vcombine.low %v442_v58, %v450_v59  ;;  %v3504_v15 = vcombine.high %v457_v5, %v465_v6  ;;  %v521_v55 = vld [vmem:[%s5081_s7 + $0x3a0] sm:$0xff]  ;;  %v530_v58 = vld [vmem:[%s5081_s7 + $0x3e8] sm:$0xff] }
 0x13b   : > { %2560 = vmatprep.mubr.bf16.mxu1 %v3534_v16  ;;  %v3506_v16 = vcombine.high %v458_v7, %v466_v9  ;;  %v529_v56 = vld [vmem:[%s5081_s7 + $0x3e0] sm:$0xff] }
 0x141   : > { %2464 = vmatmul.mubr.bf16.gmra.mrb[52].mxu0 %v3531_v21  ;;  %v473_v21 = vld [vmem:[%s5081_s7 + $0x220] sm:$0xff] }
 0x142   : > { %2561 = vmatmul.mubr.bf16.gmra.mrb[52].mxu1 %v3533_v22  ;;  %2471 = vmatprep.mubr.bf16.mxu0 %v3548_v23  ;;  %v481_v22 = vld [vmem:[%s5081_s7 + $0x260] sm:$0xff]  ;;  %v474_v23 = vld [vmem:[%s5081_s7 + $0x228] sm:$0xff] }
 0x143   : > { %2568 = vmatprep.mubr.bf16.mxu1 %v3550_v24  ;;  %v4527_v24 = vld [vmem:[%s5088_s0 + $0x328] sm:$0xff]   ;;  %v3521_v44 = vcombine.low %v474_v23, %v482_v25 }
 0x149   : > { %2472 = vmatmul.mubr.bf16.gmra.mrb[56].mxu0 %v3547_v29  ;;  %v4532_v29 = vld [vmem:[%s5088_s0 + $0x3f0] sm:$0xff]  }
 0x14a   : > { %2569 = vmatmul.mubr.bf16.gmra.mrb[56].mxu1 %v3549_v30  ;;  %2479 = vmatprep.mubr.bf16.mxu0 %v3564_v31  ;;  %v3505_v30 = vcombine.low %v458_v7, %v466_v9  ;;  %v3520_v31 = vcombine.high %v473_v21, %v481_v22  ;;  %v427_v7 = vld [vmem:[%s5081_s7 + $0xb0] sm:$0xff]  ;;  %v428_v9 = vld [vmem:[%s5081_s7 + $0xb8] sm:$0xff] }
 0x14b   : > { %2576 = vmatprep.mubr.bf16.mxu1 %v3566_v32  ;;  %v3522_v32 = vcombine.high %v474_v23, %v482_v25  ;;  %v459_v23 = vld [vmem:[%s5081_s7 + $0x1b0] sm:$0xff]  ;;  %v460_v25 = vld [vmem:[%s5081_s7 + $0x1b8] sm:$0xff] }
 0x151   : > { %2480 = vmatmul.mubr.bf16.gmra.mrb[60].mxu0 %v3563_v37  ;;  %v489_v37 = vld [vmem:[%s5081_s7 + $0x2a0] sm:$0xff] }
 0x152   : > { %2577 = vmatmul.mubr.bf16.gmra.mrb[60].mxu1 %v3565_v38  ;;  %2617 = vmatprep.mubr.bf16.mxu0 %v3456_v39  ;;  %v497_v38 = vld [vmem:[%s5081_s7 + $0x2e0] sm:$0xff]  ;;  %v4535_v39 = vld [vmem:[%s5088_s0 + $0x338] sm:$0xff]  }
 0x153   : > { %2714 = vmatprep.mubr.bf16.mxu1 %v3458_v40  ;;  %v490_v40 = vld [vmem:[%s5081_s7 + $0x2a8] sm:$0xff]  ;;  %v3536_v45 = vcombine.high %v489_v37, %v497_v38 }
 0x159   : > { %2618 = vmatmul.mubr.bf16.vlgmr.msra.gmra.mrb[64].mxu0 %v3455_v43  ;;  %v3519_v43 = vcombine.low %v473_v21, %v481_v22 }
 0x15a   : > { %2715 = vmatmul.mubr.bf16.vlgmr.msra.gmra.mrb[64].mxu1 %v3457_v46  ;;  %4107 = vmatpush3.bf16.msra.mxu0 %v4507_v47  ;;  %v3538_v46 = vcombine.high %v490_v40, %v498_v41  ;;  %v505_v47 = vld [vmem:[%s5081_s7 + $0x320] sm:$0xff] }
 0x15b   : > { %4171 = vmatpush3.bf16.msra.mxu1 %v4509_v48  ;;  %2625 = vmatprep.mubr.bf16.mxu0 %v3472_v49  ;;  %v513_v48 = vld [vmem:[%s5081_s7 + $0x360] sm:$0xff]  ;;  %v506_v49 = vld [vmem:[%s5081_s7 + $0x328] sm:$0xff] }
 0x15c   : > { %2722 = vmatprep.mubr.bf16.mxu1 %v3474_v50  ;;  %4108 = vmatprep.subr.bf16.mxu0 %v4510_v51  ;;  %v514_v50 = vld [vmem:[%s5081_s7 + $0x368] sm:$0xff]  ;;  %v3535_v51 = vcombine.low %v489_v37, %v497_v38  ;;  %v3551_v59 = vcombine.low %v505_v47, %v513_v48 }
 0x15d   : > { %4172 = vmatprep.subr.bf16.mxu1 %v4512_v52  ;;  %v3537_v52 = vcombine.low %v490_v40, %v498_v41 }
 0x15e   : > { %4109 = vmatpush3.bf16.msra.mxu0 %v4511_v53  ;;  %v3552_v53 = vcombine.high %v505_v47, %v513_v48 }
 0x15f   : > { %4173 = vmatpush3.bf16.msra.mxu1 %v4513_v54  ;;  %4110 = vmatprep.subr.bf16.mxu0 %v4514_v57  ;;  %v3554_v54 = vcombine.high %v506_v49, %v514_v50  ;;  %v522_v57 = vld [vmem:[%s5081_s7 + $0x3a8] sm:$0xff] }
 0x160   : > { %4174 = vmatprep.subr.bf16.mxu1 %v4516_v60  ;;  %v3553_v60 = vcombine.low %v506_v49, %v514_v50 }
 0x161   : > { %2626 = vmatmul.mubr.bf16.gmra.mrb[68].mxu0 %v3471_v61  ;;  %v3568_v61 = vcombine.high %v521_v55, %v529_v56 }
 0x162   : > { %2723 = vmatmul.mubr.bf16.gmra.mrb[68].mxu1 %v3473_v62  ;;  %2633 = vmatprep.mubr.bf16.mxu0 %v3488_v63  ;;  %v3570_v62 = vcombine.high %v522_v57, %v530_v58  ;;  %v411_v63 = vld [vmem:[%s5081_s7 + $0x30] sm:$0xff] }
 0x163   : > { %2730 = vmatprep.mubr.bf16.mxu1 %v3490_v0  ;;  %4111 = vmatpush3.bf16.msra.mxu0 %v4515_v1  ;;  %v419_v0 = vld [vmem:[%s5081_s7 + $0x70] sm:$0xff]  ;;  %v412_v1 = vld [vmem:[%s5081_s7 + $0x38] sm:$0xff] }
 0x164   : > { %4175 = vmatpush3.bf16.msra.mxu1 %v4517_v2  ;;  %4112 = vmatprep.subr.bf16.mxu0 %v4518_v3  ;;  %v420_v2 = vld [vmem:[%s5081_s7 + $0x78] sm:$0xff]  ;;  %v3567_v3 = vcombine.low %v521_v55, %v529_v56  ;;  %v3460_v5 = vcombine.high %v411_v63, %v419_v0 }
 0x165   : > { %4176 = vmatprep.subr.bf16.mxu1 %v4520_v4  ;;  %v3569_v4 = vcombine.low %v522_v57, %v530_v58  ;;  %v3462_v6 = vcombine.high %v412_v1, %v420_v2  ;;  %v492_v56 = vld [vmem:[%s5081_s7 + $0x2b8] sm:$0xff] }
 0x166   : > { %v500_v57 = vld [vmem:[%s5081_s7 + $0x2f8] sm:$0xff] }
 0x167   : > { %4113 = vmatpush3.bf16.msra.mxu0 %v4519_v8  ;;  %v435_v8 = vld [vmem:[%s5081_s7 + $0xf0] sm:$0xff] }
 0x168   : > { %4177 = vmatpush3.bf16.msra.mxu1 %v4521_v10  ;;  %4114 = vmatprep.subr.bf16.mxu0 %v4522_v11  ;;  %v436_v10 = vld [vmem:[%s5081_s7 + $0xf8] sm:$0xff]  ;;  %v3459_v11 = vcombine.low %v411_v63, %v419_v0 }
 0x169   : > { %2634 = vmatmul.mubr.bf16.gmra.mrb[72].mxu0 %v3487_v12  ;;  %4178 = vmatprep.subr.bf16.mxu1 %v4524_v13  ;;  %v3461_v12 = vcombine.low %v412_v1, %v420_v2  ;;  %v3476_v13 = vcombine.high %v427_v7, %v435_v8 }
 0x16a   : > { %2731 = vmatmul.mubr.bf16.gmra.mrb[72].mxu1 %v3489_v14  ;;  %2641 = vmatprep.mubr.bf16.mxu0 %v3504_v15  ;;  %v3478_v14 = vcombine.high %v428_v9, %v436_v10  ;;  %v443_v15 = vld [vmem:[%s5081_s7 + $0x130] sm:$0xff] }
 0x16b   : > { %2738 = vmatprep.mubr.bf16.mxu1 %v3506_v16  ;;  %4115 = vmatpush3.bf16.msra.mxu0 %v4523_v17  ;;  %v451_v16 = vld [vmem:[%s5081_s7 + $0x170] sm:$0xff]  ;;  %v444_v17 = vld [vmem:[%s5081_s7 + $0x138] sm:$0xff] }
 0x16c   : > { %4179 = vmatpush3.bf16.msra.mxu1 %v4525_v18  ;;  %4116 = vmatprep.subr.bf16.mxu0 %v4526_v19  ;;  %v452_v18 = vld [vmem:[%s5081_s7 + $0x178] sm:$0xff]  ;;  %v3475_v19 = vcombine.low %v427_v7, %v435_v8  ;;  %v3492_v21 = vcombine.high %v443_v15, %v451_v16 }
 0x16d   : > { %4180 = vmatprep.subr.bf16.mxu1 %v4528_v20  ;;  %v3477_v20 = vcombine.low %v428_v9, %v436_v10  ;;  %v3494_v22 = vcombine.high %v444_v17, %v452_v18 }
 0x16f   : > { %4117 = vmatpush3.bf16.msra.mxu0 %v4527_v24  ;;  %v467_v24 = vld [vmem:[%s5081_s7 + $0x1f0] sm:$0xff] }
 0x170   : > { %4181 = vmatpush3.bf16.msra.mxu1 %v4529_v26  ;;  %4118 = vmatprep.subr.bf16.mxu0 %v4530_v27  ;;  %v468_v26 = vld [vmem:[%s5081_s7 + $0x1f8] sm:$0xff]  ;;  %v3491_v27 = vcombine.low %v443_v15, %v451_v16  ;;  %v3507_v38 = vcombine.low %v459_v23, %v467_v24 }
 0x171   : > { %2642 = vmatmul.mubr.bf16.gmra.mrb[76].mxu0 %v3503_v28  ;;  %4182 = vmatprep.subr.bf16.mxu1 %v4532_v29  ;;  %v3493_v28 = vcombine.low %v444_v17, %v452_v18  ;;  %v3508_v29 = vcombine.high %v459_v23, %v467_v24  ;;  %v516_v15 = vld [vmem:[%s5081_s7 + $0x378] sm:$0xff] }
 0x172   : > { %2739 = vmatmul.mubr.bf16.gmra.mrb[76].mxu1 %v3505_v30  ;;  %2649 = vmatprep.mubr.bf16.mxu0 %v3520_v31  ;;  %v3510_v30 = vcombine.high %v460_v25, %v468_v26  ;;  %v475_v31 = vld [vmem:[%s5081_s7 + $0x230] sm:$0xff] }
 0x173   : > { %2746 = vmatprep.mubr.bf16.mxu1 %v3522_v32  ;;  %4119 = vmatpush3.bf16.msra.mxu0 %v4531_v33  ;;  %v483_v32 = vld [vmem:[%s5081_s7 + $0x270] sm:$0xff] }
 0x174   : > { %4183 = vmatpush3.bf16.msra.mxu1 %v4533_v34  ;;  %4120 = vmatprep.subr.bf16.mxu0 %v4534_v35  ;;  %v476_v34 = vld [vmem:[%s5081_s7 + $0x238] sm:$0xff] }
 0x175   : > { %4184 = vmatprep.subr.bf16.mxu1 %v4536_v36  ;;  %v484_v35 = vld [vmem:[%s5081_s7 + $0x278] sm:$0xff] }
 0x176   : > { %v3526_v47 = vcombine.high %v476_v34, %v484_v35  ;;  %v3525_v0 = vcombine.low %v476_v34, %v484_v35  ;;  %v531_v34 = vld [vmem:[%s5081_s7 + $0x3f0] sm:$0xff] }
 0x177   : > { %4121 = vmatpush3.bf16.msra.mxu0 %v4535_v39 }
 0x178   : > { %4185 = vmatpush3.bf16.msra.mxu1 %v4537_v42  ;;  %v3509_v42 = vcombine.low %v460_v25, %v468_v26 }
 0x179   : > { %2650 = vmatmul.mubr.bf16.gmra.mrb[80].mxu0 %v3519_v43  ;;  %v3524_v43 = vcombine.high %v475_v31, %v483_v32 }
 0x17a   : > { %2747 = vmatmul.mubr.bf16.gmra.mrb[80].mxu1 %v3521_v44  ;;  %2657 = vmatprep.mubr.bf16.mxu0 %v3536_v45 }
 0x17b   : > { %2754 = vmatprep.mubr.bf16.mxu1 %v3538_v46 }
 0x181   : > { %2658 = vmatmul.mubr.bf16.gmra.mrb[84].mxu0 %v3535_v51 }
 0x182   : > { %2755 = vmatmul.mubr.bf16.gmra.mrb[84].mxu1 %v3537_v52  ;;  %2665 = vmatprep.mubr.bf16.mxu0 %v3552_v53  ;;  %v491_v53 = vld [vmem:[%s5081_s7 + $0x2b0] sm:$0xff] }
 0x183   : > { %2762 = vmatprep.mubr.bf16.mxu1 %v3554_v54  ;;  %v499_v54 = vld [vmem:[%s5081_s7 + $0x2f0] sm:$0xff] }
 0x184   : > { %v3540_v1 = vcombine.high %v491_v53, %v499_v54  ;;  %v3539_v18 = vcombine.low %v491_v53, %v499_v54 }
 0x189   : > { %2666 = vmatmul.mubr.bf16.gmra.mrb[88].mxu0 %v3551_v59 }
 0x18a   : > { %2763 = vmatmul.mubr.bf16.gmra.mrb[88].mxu1 %v3553_v60  ;;  %2673 = vmatprep.mubr.bf16.mxu0 %v3568_v61  ;;  %v3523_v60 = vcombine.low %v475_v31, %v483_v32 }
 0x18b   : > { %2770 = vmatprep.mubr.bf16.mxu1 %v3570_v62 }
 0x191   : > { %2674 = vmatmul.mubr.bf16.gmra.mrb[92].mxu0 %v3567_v3 }
 0x192   : > { %2771 = vmatmul.mubr.bf16.gmra.mrb[92].mxu1 %v3569_v4  ;;  %2811 = vmatprep.mubr.bf16.mxu0 %v3460_v5  ;;  %v3542_v5 = vcombine.high %v492_v56, %v500_v57 }
 0x193   : > { %2908 = vmatprep.mubr.bf16.mxu1 %v3462_v6 }
 0x199   : > { %2812 = vmatmul.mubr.bf16.vlgmr.msra.gmra.mrb[96].mxu0 %v3459_v11  ;;  %v507_v11 = vld [vmem:[%s5081_s7 + $0x330] sm:$0xff] }
 0x19a   : > { %2909 = vmatmul.mubr.bf16.vlgmr.msra.gmra.mrb[96].mxu1 %v3461_v12  ;;  %2819 = vmatprep.mubr.bf16.mxu0 %v3476_v13  ;;  %v515_v12 = vld [vmem:[%s5081_s7 + $0x370] sm:$0xff] }
 0x19b   : > { %2916 = vmatprep.mubr.bf16.mxu1 %v3478_v14  ;;  %v508_v14 = vld [vmem:[%s5081_s7 + $0x338] sm:$0xff]  ;;  %v3556_v23 = vcombine.high %v507_v11, %v515_v12 }
 0x1a1   : > { %2820 = vmatmul.mubr.bf16.gmra.mrb[100].mxu0 %v3475_v19 }
 0x1a2   : > { %2917 = vmatmul.mubr.bf16.gmra.mrb[100].mxu1 %v3477_v20  ;;  %2827 = vmatprep.mubr.bf16.mxu0 %v3492_v21 }
 0x1a3   : > { %2924 = vmatprep.mubr.bf16.mxu1 %v3494_v22  ;;  %v3541_v22 = vcombine.low %v492_v56, %v500_v57 }
 0x1a9   : > { %2828 = vmatmul.mubr.bf16.gmra.mrb[104].mxu0 %v3491_v27  ;;  %v3558_v27 = vcombine.high %v508_v14, %v516_v15 }
 0x1aa   : > { %2925 = vmatmul.mubr.bf16.gmra.mrb[104].mxu1 %v3493_v28  ;;  %2835 = vmatprep.mubr.bf16.mxu0 %v3508_v29 }
 0x1ab   : > { %2932 = vmatprep.mubr.bf16.mxu1 %v3510_v30 }
 0x1ac   : > { %v3738_v33 = vpop.f32.mrb[0].mxu0 }
 0x1ad   : > { %v3802_v36 = vpop.f32.mrb[0].mxu1  ;;  %v3739_v37 = vpop.f32.mrb[1].mxu0 }
 0x1ae   : > { %v3740_v39 = vadd.f32 %v3739_v37, %v3738_v33  ;;  %v3803_v40 = vpop.f32.mrb[1].mxu1  ;;  %v3741_v41 = vpop.f32.mrb[2].mxu0  ;;  %v523_v33 = vld [vmem:[%s5081_s7 + $0x3b0] sm:$0xff]  ;;  %v532_v37 = vld [vmem:[%s5081_s7 + $0x3f8] sm:$0xff] }
 0x1af   : > { %v3804_v44 = vadd.f32 %v3803_v40, %v3802_v36  ;;  %v3805_v45 = vpop.f32.mrb[2].mxu1  ;;  %v3742_v46 = vpop.f32.mrb[3].mxu0  ;;  %v524_v36 = vld [vmem:[%s5081_s7 + $0x3b8] sm:$0xff]  ;;  %v3555_v40 = vcombine.low %v507_v11, %v515_v12 }
 0x1b0   : > { %v3743_v48 = vadd.f32 %v3742_v46, %v3741_v41  ;;  %v3806_v49 = vpop.f32.mrb[3].mxu1 }
 0x1b1   : > { %v5347_v50 = vadd.f32 %v3804_v44, %v3740_v39  ;;  %v3807_v51 = vadd.f32 %v3806_v49, %v3805_v45  ;;  %2836 = vmatmul.mubr.bf16.gmra.mrb[108].mxu0 %v3507_v38  ;;  %v3557_v44 = vcombine.low %v508_v14, %v516_v15  ;;  %v3572_v45 = vcombine.high %v523_v33, %v531_v34 }
 0x1b2   : > { %2933 = vmatmul.mubr.bf16.gmra.mrb[108].mxu1 %v3509_v42  ;;  %2843 = vmatprep.mubr.bf16.mxu0 %v3524_v43  ;;  %v3574_v49 = vcombine.high %v524_v36, %v532_v37 }
 0x1b3   : > { %v5349_v52 = vadd.f32 %v3807_v51, %v3743_v48  ;;  %2940 = vmatprep.mubr.bf16.mxu1 %v3526_v47 }
 0x1b4   : > { %v3744_v55 = vpop.f32.mrb[4].mxu0 }
 0x1b5   : > { %v3808_v58 = vpop.f32.mrb[4].mxu1  ;;  %v3745_v59 = vpop.f32.mrb[5].mxu0 }
 0x1b6   : > { %v3746_v61 = vadd.f32 %v3745_v59, %v3744_v55  ;;  %v3809_v62 = vpop.f32.mrb[5].mxu1  ;;  %v3747_v63 = vpop.f32.mrb[6].mxu0 }
 0x1b7   : > { %v3810_v2 = vadd.f32 %v3809_v62, %v3808_v58  ;;  %v3811_v3 = vpop.f32.mrb[6].mxu1  ;;  %v3748_v4 = vpop.f32.mrb[7].mxu0 }
 0x1b8   : > { %v3749_v6 = vadd.f32 %v3748_v4, %v3747_v63  ;;  %v3812_v7 = vpop.f32.mrb[7].mxu1 }
 0x1b9   : > { %v5355_v8 = vadd.f32 %v3810_v2, %v3746_v61  ;;  %v3813_v9 = vadd.f32 %v3812_v7, %v3811_v3  ;;  %2844 = vmatmul.mubr.bf16.gmra.mrb[112].mxu0 %v3523_v60  ;;  %v3571_v60 = vcombine.low %v523_v33, %v531_v34 }
 0x1ba   : > { %2941 = vmatmul.mubr.bf16.gmra.mrb[112].mxu1 %v3525_v0  ;;  %2851 = vmatprep.mubr.bf16.mxu0 %v3540_v1  ;;  %v3573_v0 = vcombine.low %v524_v36, %v532_v37 }
 0x1bb   : > { %v5357_v10 = vadd.f32 %v3813_v9, %v3749_v6  ;;  %2948 = vmatprep.mubr.bf16.mxu1 %v3542_v5 }
 0x1bc   : > { %v3750_v13 = vpop.f32.mrb[8].mxu0 }
 0x1bd   : > { %v3814_v16 = vpop.f32.mrb[8].mxu1  ;;  %v3751_v17 = vpop.f32.mrb[9].mxu0 }
 0x1be   : > { %v3752_v19 = vadd.f32 %v3751_v17, %v3750_v13  ;;  %v3815_v20 = vpop.f32.mrb[9].mxu1  ;;  %v3753_v21 = vpop.f32.mrb[10].mxu0 }
 0x1bf   : > { %v3816_v24 = vadd.f32 %v3815_v20, %v3814_v16  ;;  %v3817_v25 = vpop.f32.mrb[10].mxu1  ;;  %v3754_v26 = vpop.f32.mrb[11].mxu0 }
 0x1c0   : > { %v3755_v28 = vadd.f32 %v3754_v26, %v3753_v21  ;;  %v3818_v29 = vpop.f32.mrb[11].mxu1 }
 0x1c1   : > { %v5363_v30 = vadd.f32 %v3816_v24, %v3752_v19  ;;  %v3819_v31 = vadd.f32 %v3818_v29, %v3817_v25  ;;  %2852 = vmatmul.mubr.bf16.gmra.mrb[116].mxu0 %v3539_v18 }
 0x1c2   : > { %2949 = vmatmul.mubr.bf16.gmra.mrb[116].mxu1 %v3541_v22  ;;  %2859 = vmatprep.mubr.bf16.mxu0 %v3556_v23 }
 0x1c3   : > { %v5365_v32 = vadd.f32 %v3819_v31, %v3755_v28  ;;  %2956 = vmatprep.mubr.bf16.mxu1 %v3558_v27 }
 0x1c4   : > { %v3756_v35 = vpop.f32.mrb[12].mxu0 }
 0x1c5   : > { %v3820_v38 = vpop.f32.mrb[12].mxu1  ;;  %v3757_v39 = vpop.f32.mrb[13].mxu0 }
 0x1c6   : > { %v3758_v41 = vadd.f32 %v3757_v39, %v3756_v35  ;;  %v3821_v42 = vpop.f32.mrb[13].mxu1  ;;  %v3759_v43 = vpop.f32.mrb[14].mxu0 }
 0x1c7   : > { %v3822_v46 = vadd.f32 %v3821_v42, %v3820_v38  ;;  %v3823_v47 = vpop.f32.mrb[14].mxu1  ;;  %v3760_v48 = vpop.f32.mrb[15].mxu0 }
 0x1c8   : > { %v3761_v51 = vadd.f32 %v3760_v48, %v3759_v43  ;;  %v3824_v53 = vpop.f32.mrb[15].mxu1 }
 0x1c9   : > { %v5371_v54 = vadd.f32 %v3822_v46, %v3758_v41  ;;  %v3825_v55 = vadd.f32 %v3824_v53, %v3823_v47  ;;  %2860 = vmatmul.mubr.bf16.gmra.mrb[120].mxu0 %v3555_v40 }
 0x1ca   : > { %2957 = vmatmul.mubr.bf16.gmra.mrb[120].mxu1 %v3557_v44  ;;  %2867 = vmatprep.mubr.bf16.mxu0 %v3572_v45 }
 0x1cb   : > { %v5373_v56 = vadd.f32 %v3825_v55, %v3761_v51  ;;  %2964 = vmatprep.mubr.bf16.mxu1 %v3574_v49 }
 0x1cc   : > { %v3762_v57 = vpop.f32.mrb[16].mxu0 }
 0x1cd   : > { %v3826_v58 = vpop.f32.mrb[16].mxu1  ;;  %v3763_v59 = vpop.f32.mrb[17].mxu0 }
 0x1ce   : > { %v3764_v61 = vadd.f32 %v3763_v59, %v3762_v57  ;;  %v3827_v62 = vpop.f32.mrb[17].mxu1  ;;  %v3765_v63 = vpop.f32.mrb[18].mxu0 }
 0x1cf   : > { %v3828_v1 = vadd.f32 %v3827_v62, %v3826_v58  ;;  %v3829_v2 = vpop.f32.mrb[18].mxu1  ;;  %v3766_v3 = vpop.f32.mrb[19].mxu0 }
 0x1d0   : > { %v3767_v4 = vadd.f32 %v3766_v3, %v3765_v63  ;;  %v3830_v5 = vpop.f32.mrb[19].mxu1 }
 0x1d1   : > { %v5375_v6 = vadd.f32 %v3828_v1, %v3764_v61  ;;  %v3831_v7 = vadd.f32 %v3830_v5, %v3829_v2  ;;  %2868 = vmatmul.mubr.bf16.gmra.mrb[124].mxu0 %v3571_v60 }
 0x1d2   : > { %2965 = vmatmul.mubr.bf16.gmra.mrb[124].mxu1 %v3573_v0 }
 0x1d3   : > { %v5377_v9 = vadd.f32 %v3831_v7, %v3767_v4 }
 0x1d4   : > { %v3768_v11 = vpop.f32.mrb[20].mxu0 }
 0x1d5   : > { %v3832_v12 = vpop.f32.mrb[20].mxu1  ;;  %v3769_v13 = vpop.f32.mrb[21].mxu0 }
 0x1d6   : > { %v3770_v14 = vadd.f32 %v3769_v13, %v3768_v11  ;;  %v3833_v15 = vpop.f32.mrb[21].mxu1  ;;  %v3771_v16 = vpop.f32.mrb[22].mxu0 }
 0x1d7   : > { %v3834_v17 = vadd.f32 %v3833_v15, %v3832_v12  ;;  %v3835_v18 = vpop.f32.mrb[22].mxu1  ;;  %v3772_v19 = vpop.f32.mrb[23].mxu0 }
 0x1d8   : > { %v3773_v20 = vadd.f32 %v3772_v19, %v3771_v16  ;;  %v3836_v21 = vpop.f32.mrb[23].mxu1 }
 0x1d9   : > { %v5379_v22 = vadd.f32 %v3834_v17, %v3770_v14  ;;  %v3837_v23 = vadd.f32 %v3836_v21, %v3835_v18 }
 0x1db   : > { %v5381_v24 = vadd.f32 %v3837_v23, %v3773_v20 }
 0x1dc   : > { %v3774_v25 = vpop.f32.mrb[24].mxu0 }
 0x1dd   : > { %v3838_v26 = vpop.f32.mrb[24].mxu1  ;;  %v3775_v27 = vpop.f32.mrb[25].mxu0 }
 0x1de   : > { %v3776_v28 = vadd.f32 %v3775_v27, %v3774_v25  ;;  %v3839_v29 = vpop.f32.mrb[25].mxu1  ;;  %v3777_v31 = vpop.f32.mrb[26].mxu0 }
 0x1df   : > { %v3840_v33 = vadd.f32 %v3839_v29, %v3838_v26  ;;  %v3841_v34 = vpop.f32.mrb[26].mxu1  ;;  %v3778_v35 = vpop.f32.mrb[27].mxu0 }
 0x1e0   : > { %v3779_v36 = vadd.f32 %v3778_v35, %v3777_v31  ;;  %v3842_v37 = vpop.f32.mrb[27].mxu1 }
 0x1e1   : > { %v5383_v38 = vadd.f32 %v3840_v33, %v3776_v28  ;;  %v3843_v39 = vadd.f32 %v3842_v37, %v3841_v34 }
 0x1e3   : > { %v5385_v40 = vadd.f32 %v3843_v39, %v3779_v36 }
 0x1e4   : > { %v3780_v41 = vpop.f32.mrb[28].mxu0 }
 0x1e5   : > { %v3844_v42 = vpop.f32.mrb[28].mxu1  ;;  %v3781_v43 = vpop.f32.mrb[29].mxu0 }
 0x1e6   : > { %v3782_v44 = vadd.f32 %v3781_v43, %v3780_v41  ;;  %v3845_v45 = vpop.f32.mrb[29].mxu1  ;;  %v3783_v46 = vpop.f32.mrb[30].mxu0 }
 0x1e7   : > { %v3846_v47 = vadd.f32 %v3845_v45, %v3844_v42  ;;  %v3847_v48 = vpop.f32.mrb[30].mxu1  ;;  %v3784_v49 = vpop.f32.mrb[31].mxu0 }
 0x1e8   : > { %v3785_v51 = vadd.f32 %v3784_v49, %v3783_v46  ;;  %v3848_v53 = vpop.f32.mrb[31].mxu1 }
 0x1e9   : > { %v5387_v55 = vadd.f32 %v3846_v47, %v3782_v44  ;;  %v3849_v57 = vadd.f32 %v3848_v53, %v3847_v48 }
 0x1eb   : > { %v5389_v58 = vadd.f32 %v3849_v57, %v3785_v51 }
 0x1ec   : > { %v3866_v59 = vpop.f32.mrb[32].mxu0 }
 0x1ed   : > { %v3930_v60 = vpop.f32.mrb[32].mxu1  ;;  %v3867_v61 = vpop.f32.mrb[33].mxu0 }
 0x1ee   : > { %v3868_v62 = vadd.f32 %v3867_v61, %v3866_v59  ;;  %v3931_v63 = vpop.f32.mrb[33].mxu1  ;;  %v3869_v0 = vpop.f32.mrb[34].mxu0 }
 0x1ef   : > { %v3932_v1 = vadd.f32 %v3931_v63, %v3930_v60  ;;  %v3933_v2 = vpop.f32.mrb[34].mxu1  ;;  %v3870_v3 = vpop.f32.mrb[35].mxu0 }
 0x1f0   : > { %v2426_v4 = vadd.f32 %v3868_v62, %v5347_v50  ;;  %v3871_v5 = vadd.f32 %v3870_v3, %v3869_v0  ;;  %v3934_v7 = vpop.f32.mrb[35].mxu1 }
 0x1f1   : > { %v3935_v11 = vadd.f32 %v3934_v7, %v3933_v2 }
 0x1f2   : > { %v5392_v12 = vadd.f32 %v3932_v1, %v2426_v4  ;;  %v2429_v13 = vadd.f32 %v3871_v5, %v5349_v52 }
 0x1f4   : > { %v5395_v14 = vadd.f32 %v3935_v11, %v2429_v13  ;;  %v3872_v15 = vpop.f32.mrb[36].mxu0 }
 0x1f5   : > { %v3936_v16 = vpop.f32.mrb[36].mxu1  ;;  %v3873_v17 = vpop.f32.mrb[37].mxu0 }
 0x1f6   : > { %v3874_v18 = vadd.f32 %v3873_v17, %v3872_v15  ;;  %v3937_v19 = vpop.f32.mrb[37].mxu1  ;;  %v3875_v20 = vpop.f32.mrb[38].mxu0 }
 0x1f7   : > { %v3938_v21 = vadd.f32 %v3937_v19, %v3936_v16  ;;  %v3939_v23 = vpop.f32.mrb[38].mxu1  ;;  %v3876_v25 = vpop.f32.mrb[39].mxu0 }
 0x1f8   : > { %v2434_v50 = vadd.f32 %v3874_v18, %v5355_v8  ;;  %v3877_v26 = vadd.f32 %v3876_v25, %v3875_v20  ;;  %v3940_v27 = vpop.f32.mrb[39].mxu1 }
 0x1f9   : > { %v3941_v28 = vadd.f32 %v3940_v27, %v3939_v23 }
 0x1fa   : > { %v5398_v29 = vadd.f32 %v3938_v21, %v2434_v50  ;;  %v2437_v52 = vadd.f32 %v3877_v26, %v5357_v10 }
 0x1fc   : > { %v5401_v31 = vadd.f32 %v3941_v28, %v2437_v52  ;;  %v3878_v33 = vpop.f32.mrb[40].mxu0 }
 0x1fd   : > { %v3942_v34 = vpop.f32.mrb[40].mxu1  ;;  %v3879_v35 = vpop.f32.mrb[41].mxu0 }
 0x1fe   : > { %v3880_v36 = vadd.f32 %v3879_v35, %v3878_v33  ;;  %v3943_v37 = vpop.f32.mrb[41].mxu1  ;;  %v3881_v39 = vpop.f32.mrb[42].mxu0 }
 0x1ff   : > { %v3944_v41 = vadd.f32 %v3943_v37, %v3942_v34  ;;  %v3945_v42 = vpop.f32.mrb[42].mxu1  ;;  %v3882_v43 = vpop.f32.mrb[43].mxu0 }
 0x200   : > { %v2442_v8 = vadd.f32 %v3880_v36, %v5363_v30  ;;  %v3883_v44 = vadd.f32 %v3882_v43, %v3881_v39  ;;  %v3946_v45 = vpop.f32.mrb[43].mxu1 }
 0x201   : > { %v3947_v46 = vadd.f32 %v3946_v45, %v3945_v42 }
 0x202   : > { %v5404_v47 = vadd.f32 %v3944_v41, %v2442_v8  ;;  %v2445_v10 = vadd.f32 %v3883_v44, %v5365_v32 }
 0x204   : > { %v5407_v48 = vadd.f32 %v3947_v46, %v2445_v10  ;;  %v3884_v49 = vpop.f32.mrb[44].mxu0 }
 0x205   : > { %v3948_v51 = vpop.f32.mrb[44].mxu1  ;;  %v3885_v53 = vpop.f32.mrb[45].mxu0 }
 0x206   : > { %v3886_v57 = vadd.f32 %v3885_v53, %v3884_v49  ;;  %v3949_v59 = vpop.f32.mrb[45].mxu1  ;;  %v3887_v60 = vpop.f32.mrb[46].mxu0 }
 0x207   : > { %v3950_v61 = vadd.f32 %v3949_v59, %v3948_v51  ;;  %v3951_v62 = vpop.f32.mrb[46].mxu1  ;;  %v3888_v63 = vpop.f32.mrb[47].mxu0 }
 0x208   : > { %v2450_v30 = vadd.f32 %v3886_v57, %v5371_v54  ;;  %v3889_v0 = vadd.f32 %v3888_v63, %v3887_v60  ;;  %v3952_v1 = vpop.f32.mrb[47].mxu1 }
 0x209   : > { %v3953_v2 = vadd.f32 %v3952_v1, %v3951_v62 }
 0x20a   : > { %v5410_v3 = vadd.f32 %v3950_v61, %v2450_v30  ;;  %v2453_v32 = vadd.f32 %v3889_v0, %v5373_v56 }
 0x20c   : > { %v5413_v4 = vadd.f32 %v3953_v2, %v2453_v32  ;;  %v3890_v5 = vpop.f32.mrb[48].mxu0 }
 0x20d   : > { %v3954_v7 = vpop.f32.mrb[48].mxu1  ;;  %v3891_v11 = vpop.f32.mrb[49].mxu0 }
 0x20e   : > { %v3892_v13 = vadd.f32 %v3891_v11, %v3890_v5  ;;  %v3955_v15 = vpop.f32.mrb[49].mxu1  ;;  %v3893_v16 = vpop.f32.mrb[50].mxu0 }
 0x20f   : > { %v3956_v17 = vadd.f32 %v3955_v15, %v3954_v7  ;;  %v3957_v18 = vpop.f32.mrb[50].mxu1  ;;  %v3894_v19 = vpop.f32.mrb[51].mxu0 }
 0x210   : > { %v2458_v54 = vadd.f32 %v3892_v13, %v5375_v6  ;;  %v3895_v20 = vadd.f32 %v3894_v19, %v3893_v16  ;;  %v3958_v21 = vpop.f32.mrb[51].mxu1 }
 0x211   : > { %v3959_v23 = vadd.f32 %v3958_v21, %v3957_v18 }
 0x212   : > { %v5416_v25 = vadd.f32 %v3956_v17, %v2458_v54  ;;  %v2461_v56 = vadd.f32 %v3895_v20, %v5377_v9 }
 0x214   : > { %v5419_v50 = vadd.f32 %v3959_v23, %v2461_v56  ;;  %v3896_v26 = vpop.f32.mrb[52].mxu0 }
 0x215   : > { %v3960_v27 = vpop.f32.mrb[52].mxu1  ;;  %v3897_v28 = vpop.f32.mrb[53].mxu0 }
 0x216   : > { %v3898_v52 = vadd.f32 %v3897_v28, %v3896_v26  ;;  %v3961_v33 = vpop.f32.mrb[53].mxu1  ;;  %v3899_v34 = vpop.f32.mrb[54].mxu0 }
 0x217   : > { %v3962_v35 = vadd.f32 %v3961_v33, %v3960_v27  ;;  %v3963_v36 = vpop.f32.mrb[54].mxu1  ;;  %v3900_v37 = vpop.f32.mrb[55].mxu0 }
 0x218   : > { %v2466_v6 = vadd.f32 %v3898_v52, %v5379_v22  ;;  %v3901_v39 = vadd.f32 %v3900_v37, %v3899_v34  ;;  %v3964_v41 = vpop.f32.mrb[55].mxu1 }
 0x219   : > { %v3965_v42 = vadd.f32 %v3964_v41, %v3963_v36 }
 0x21a   : > { %v5422_v43 = vadd.f32 %v3962_v35, %v2466_v6  ;;  %v2469_v9 = vadd.f32 %v3901_v39, %v5381_v24 }
 0x21c   : > { %v5425_v8 = vadd.f32 %v3965_v42, %v2469_v9  ;;  %v3902_v44 = vpop.f32.mrb[56].mxu0 }
 0x21d   : > { %v3966_v45 = vpop.f32.mrb[56].mxu1  ;;  %v3903_v46 = vpop.f32.mrb[57].mxu0 }
 0x21e   : > { %v3904_v10 = vadd.f32 %v3903_v46, %v3902_v44  ;;  %v3967_v49 = vpop.f32.mrb[57].mxu1  ;;  %v3905_v51 = vpop.f32.mrb[58].mxu0 }
 0x21f   : > { %v3968_v53 = vadd.f32 %v3967_v49, %v3966_v45  ;;  %v3969_v57 = vpop.f32.mrb[58].mxu1  ;;  %v3906_v59 = vpop.f32.mrb[59].mxu0 }
 0x220   : > { %v2474_v22 = vadd.f32 %v3904_v10, %v5383_v38  ;;  %v3907_v60 = vadd.f32 %v3906_v59, %v3905_v51  ;;  %v3970_v61 = vpop.f32.mrb[59].mxu1 }
 0x221   : > { %v3971_v62 = vadd.f32 %v3970_v61, %v3969_v57 }
 0x222   : > { %v5428_v63 = vadd.f32 %v3968_v53, %v2474_v22  ;;  %v2477_v24 = vadd.f32 %v3907_v60, %v5385_v40 }
 0x224   : > { %v5431_v30 = vadd.f32 %v3971_v62, %v2477_v24  ;;  %v3908_v0 = vpop.f32.mrb[60].mxu0 }
 0x225   : > { %v3972_v1 = vpop.f32.mrb[60].mxu1  ;;  %v3909_v2 = vpop.f32.mrb[61].mxu0 }
 0x226   : > { %v3910_v32 = vadd.f32 %v3909_v2, %v3908_v0  ;;  %v3973_v5 = vpop.f32.mrb[61].mxu1  ;;  %v3911_v7 = vpop.f32.mrb[62].mxu0 }
 0x227   : > { %v3974_v11 = vadd.f32 %v3973_v5, %v3972_v1  ;;  %v3975_v13 = vpop.f32.mrb[62].mxu1  ;;  %v3912_v15 = vpop.f32.mrb[63].mxu0 }
 0x228   : > { %v2482_v38 = vadd.f32 %v3910_v32, %v5387_v55  ;;  %v3913_v16 = vadd.f32 %v3912_v15, %v3911_v7  ;;  %v3976_v17 = vpop.f32.mrb[63].mxu1 }
 0x229   : > { %v3977_v18 = vadd.f32 %v3976_v17, %v3975_v13 }
 0x22a   : > { %v5434_v19 = vadd.f32 %v3974_v11, %v2482_v38  ;;  %v2485_v40 = vadd.f32 %v3913_v16, %v5389_v58 }
 0x22c   : > { %v5437_v54 = vadd.f32 %v3977_v18, %v2485_v40  ;;  %v3994_v20 = vpop.f32.mrb[64].mxu0 }
 0x22d   : > { %v4058_v21 = vpop.f32.mrb[64].mxu1  ;;  %v3995_v23 = vpop.f32.mrb[65].mxu0 }
 0x22e   : > { %v3996_v56 = vadd.f32 %v3995_v23, %v3994_v20  ;;  %v4059_v26 = vpop.f32.mrb[65].mxu1  ;;  %v3997_v27 = vpop.f32.mrb[66].mxu0 }
 0x22f   : > { %v4060_v28 = vadd.f32 %v4059_v26, %v4058_v21  ;;  %v4061_v52 = vpop.f32.mrb[66].mxu1  ;;  %v3998_v33 = vpop.f32.mrb[67].mxu0 }
 0x230   : > { %v2620_v55 = vadd.f32 %v3996_v56, %v5392_v12  ;;  %v3999_v34 = vadd.f32 %v3998_v33, %v3997_v27  ;;  %v4062_v35 = vpop.f32.mrb[67].mxu1 }
 0x231   : > { %v4063_v36 = vadd.f32 %v4062_v35, %v4061_v52 }
 0x232   : > { %v5440_v37 = vadd.f32 %v4060_v28, %v2620_v55  ;;  %v2623_v58 = vadd.f32 %v3999_v34, %v5395_v14 }
 0x234   : > { %v5443_v6 = vadd.f32 %v4063_v36, %v2623_v58  ;;  %v4000_v39 = vpop.f32.mrb[68].mxu0 }
 0x235   : > { %v4064_v41 = vpop.f32.mrb[68].mxu1  ;;  %v4001_v42 = vpop.f32.mrb[69].mxu0 }
 0x236   : > { %v4002_v9 = vadd.f32 %v4001_v42, %v4000_v39  ;;  %v4065_v44 = vpop.f32.mrb[69].mxu1  ;;  %v4003_v45 = vpop.f32.mrb[70].mxu0 }
 0x237   : > { %v4066_v46 = vadd.f32 %v4065_v44, %v4064_v41  ;;  %v4067_v10 = vpop.f32.mrb[70].mxu1  ;;  %v4004_v49 = vpop.f32.mrb[71].mxu0 }
 0x238   : > { %v2628_v12 = vadd.f32 %v4002_v9, %v5398_v29  ;;  %v4005_v51 = vadd.f32 %v4004_v49, %v4003_v45  ;;  %v4068_v53 = vpop.f32.mrb[71].mxu1 }
 0x239   : > { %v4069_v57 = vadd.f32 %v4068_v53, %v4067_v10 }
 0x23a   : > { %v5446_v59 = vadd.f32 %v4066_v46, %v2628_v12  ;;  %v2631_v14 = vadd.f32 %v4005_v51, %v5401_v31 }
 0x23c   : > { %v5449_v22 = vadd.f32 %v4069_v57, %v2631_v14  ;;  %v4006_v60 = vpop.f32.mrb[72].mxu0 }
 0x23d   : > { %v4070_v61 = vpop.f32.mrb[72].mxu1  ;;  %v4007_v62 = vpop.f32.mrb[73].mxu0 }
 0x23e   : > { %v4008_v24 = vadd.f32 %v4007_v62, %v4006_v60  ;;  %v4071_v0 = vpop.f32.mrb[73].mxu1  ;;  %v4009_v1 = vpop.f32.mrb[74].mxu0 }
 0x23f   : > { %v4072_v2 = vadd.f32 %v4071_v0, %v4070_v61  ;;  %v4073_v32 = vpop.f32.mrb[74].mxu1  ;;  %v4010_v5 = vpop.f32.mrb[75].mxu0 }
 0x240   : > { %v2636_v29 = vadd.f32 %v4008_v24, %v5404_v47  ;;  %v4011_v7 = vadd.f32 %v4010_v5, %v4009_v1  ;;  %v4074_v11 = vpop.f32.mrb[75].mxu1 }
 0x241   : > { %v4075_v13 = vadd.f32 %v4074_v11, %v4073_v32 }
 0x242   : > { %v5452_v15 = vadd.f32 %v4072_v2, %v2636_v29  ;;  %v2639_v31 = vadd.f32 %v4011_v7, %v5407_v48 }
 0x244   : > { %v5455_v38 = vadd.f32 %v4075_v13, %v2639_v31  ;;  %v4012_v16 = vpop.f32.mrb[76].mxu0 }
 0x245   : > { %v4076_v17 = vpop.f32.mrb[76].mxu1  ;;  %v4013_v18 = vpop.f32.mrb[77].mxu0 }
 0x246   : > { %v4014_v40 = vadd.f32 %v4013_v18, %v4012_v16  ;;  %v4077_v20 = vpop.f32.mrb[77].mxu1  ;;  %v4015_v21 = vpop.f32.mrb[78].mxu0 }
 0x247   : > { %v4078_v23 = vadd.f32 %v4077_v20, %v4076_v17  ;;  %v4079_v56 = vpop.f32.mrb[78].mxu1  ;;  %v4016_v26 = vpop.f32.mrb[79].mxu0 }
 0x248   : > { %v2644_v47 = vadd.f32 %v4014_v40, %v5410_v3  ;;  %v4017_v27 = vadd.f32 %v4016_v26, %v4015_v21  ;;  %v4080_v28 = vpop.f32.mrb[79].mxu1 }
 0x249   : > { %v4081_v52 = vadd.f32 %v4080_v28, %v4079_v56 }
 0x24a   : > { %v5458_v33 = vadd.f32 %v4078_v23, %v2644_v47  ;;  %v2647_v48 = vadd.f32 %v4017_v27, %v5413_v4 }
 0x24c   : > { %v5461_v55 = vadd.f32 %v4081_v52, %v2647_v48  ;;  %v4018_v34 = vpop.f32.mrb[80].mxu0 }
 0x24d   : > { %v4082_v35 = vpop.f32.mrb[80].mxu1  ;;  %v4019_v36 = vpop.f32.mrb[81].mxu0 }
 0x24e   : > { %v4020_v58 = vadd.f32 %v4019_v36, %v4018_v34  ;;  %v4083_v39 = vpop.f32.mrb[81].mxu1  ;;  %v4021_v41 = vpop.f32.mrb[82].mxu0 }
 0x24f   : > { %v4084_v42 = vadd.f32 %v4083_v39, %v4082_v35  ;;  %v4085_v9 = vpop.f32.mrb[82].mxu1  ;;  %v4022_v44 = vpop.f32.mrb[83].mxu0 }
 0x250   : > { %v2652_v3 = vadd.f32 %v4020_v58, %v5416_v25  ;;  %v4023_v45 = vadd.f32 %v4022_v44, %v4021_v41  ;;  %v4086_v46 = vpop.f32.mrb[83].mxu1 }
 0x251   : > { %v4087_v10 = vadd.f32 %v4086_v46, %v4085_v9 }
 0x252   : > { %v5464_v49 = vadd.f32 %v4084_v42, %v2652_v3  ;;  %v2655_v4 = vadd.f32 %v4023_v45, %v5419_v50 }
 0x254   : > { %v5467_v12 = vadd.f32 %v4087_v10, %v2655_v4  ;;  %v4024_v51 = vpop.f32.mrb[84].mxu0 }
 0x255   : > { %v4088_v53 = vpop.f32.mrb[84].mxu1  ;;  %v4025_v57 = vpop.f32.mrb[85].mxu0 }
 0x256   : > { %v4026_v14 = vadd.f32 %v4025_v57, %v4024_v51  ;;  %v4089_v60 = vpop.f32.mrb[85].mxu1  ;;  %v4027_v61 = vpop.f32.mrb[86].mxu0 }
 0x257   : > { %v4090_v62 = vadd.f32 %v4089_v60, %v4088_v53  ;;  %v4091_v24 = vpop.f32.mrb[86].mxu1  ;;  %v4028_v0 = vpop.f32.mrb[87].mxu0 }
 0x258   : > { %v2660_v25 = vadd.f32 %v4026_v14, %v5422_v43  ;;  %v4029_v1 = vadd.f32 %v4028_v0, %v4027_v61  ;;  %v4092_v2 = vpop.f32.mrb[87].mxu1 }
 0x259   : > { %v4093_v32 = vadd.f32 %v4092_v2, %v4091_v24  ;;  %v389_v24 = vld [vmem:[#allocation11] sm:$0xff] }
 0x25a   : > { %v5470_v5 = vadd.f32 %v4090_v62, %v2660_v25  ;;  %v2663_v50 = vadd.f32 %v4029_v1, %v5425_v8  ;;  %v390_v1 = vld [vmem:[#allocation11 + $0x8] sm:$0xff] }
 0x25c   : > { %v5473_v29 = vadd.f32 %v4093_v32, %v2663_v50  ;;  %v4030_v7 = vpop.f32.mrb[88].mxu0 }
 0x25d   : > { %v4094_v11 = vpop.f32.mrb[88].mxu1  ;;  %v4031_v13 = vpop.f32.mrb[89].mxu0 }
 0x25e   : > { %v4032_v31 = vadd.f32 %v4031_v13, %v4030_v7  ;;  %v4095_v16 = vpop.f32.mrb[89].mxu1  ;;  %v4033_v17 = vpop.f32.mrb[90].mxu0 }
 0x25f   : > { %v4096_v18 = vadd.f32 %v4095_v16, %v4094_v11  ;;  %v4097_v40 = vpop.f32.mrb[90].mxu1  ;;  %v4034_v20 = vpop.f32.mrb[91].mxu0 }
 0x260   : > { %v2668_v43 = vadd.f32 %v4032_v31, %v5428_v63  ;;  %v4035_v21 = vadd.f32 %v4034_v20, %v4033_v17  ;;  %v4098_v23 = vpop.f32.mrb[91].mxu1 }
 0x261   : > { %v4099_v56 = vadd.f32 %v4098_v23, %v4097_v40 }
 0x262   : > { %v5476_v26 = vadd.f32 %v4096_v18, %v2668_v43  ;;  %v2671_v8 = vadd.f32 %v4035_v21, %v5431_v30 }
 0x264   : > { %v5479_v47 = vadd.f32 %v4099_v56, %v2671_v8  ;;  %v4036_v27 = vpop.f32.mrb[92].mxu0 }
 0x265   : > { %v4100_v28 = vpop.f32.mrb[92].mxu1  ;;  %v4037_v52 = vpop.f32.mrb[93].mxu0 }
 0x266   : > { %v4038_v48 = vadd.f32 %v4037_v52, %v4036_v27  ;;  %v4101_v34 = vpop.f32.mrb[93].mxu1  ;;  %v4039_v35 = vpop.f32.mrb[94].mxu0  ;;  %v392_v27 = vld [vmem:[#allocation11 + $0x18] sm:$0xff] }
 0x267   : > { %v4102_v36 = vadd.f32 %v4101_v34, %v4100_v28  ;;  %v4103_v58 = vpop.f32.mrb[94].mxu1  ;;  %v4040_v39 = vpop.f32.mrb[95].mxu0 }
 0x268   : > { %v2676_v63 = vadd.f32 %v4038_v48, %v5434_v19  ;;  %v4041_v41 = vadd.f32 %v4040_v39, %v4039_v35  ;;  %v4104_v42 = vpop.f32.mrb[95].mxu1 }
 0x269   : > { %v4105_v9 = vadd.f32 %v4104_v42, %v4103_v58 }
 0x26a   : > { %v5482_v44 = vadd.f32 %v4102_v36, %v2676_v63  ;;  %v2679_v30 = vadd.f32 %v4041_v41, %v5437_v54 }
 0x26c   : > { %v5485_v3 = vadd.f32 %v4105_v9, %v2679_v30  ;;  %v4122_v45 = vpop.f32.mrb[96].mxu0 }
 0x26d   : > { %v4186_v46 = vpop.f32.mrb[96].mxu1  ;;  %v4123_v10 = vpop.f32.mrb[97].mxu0 }
 0x26e   : > { %v4124_v4 = vadd.f32 %v4123_v10, %v4122_v45  ;;  %v4187_v51 = vpop.f32.mrb[97].mxu1  ;;  %v4125_v53 = vpop.f32.mrb[98].mxu0 }
 0x26f   : > { %v4188_v57 = vadd.f32 %v4187_v51, %v4186_v46  ;;  %v4189_v14 = vpop.f32.mrb[98].mxu1  ;;  %v4126_v60 = vpop.f32.mrb[99].mxu0  ;;  %v394_v51 = vld [vmem:[#allocation11 + $0x28] sm:$0xff] }
 0x270   : > { %v2814_v19 = vadd.f32 %v4124_v4, %v5440_v37  ;;  %v4127_v61 = vadd.f32 %v4126_v60, %v4125_v53  ;;  %v4190_v62 = vpop.f32.mrb[99].mxu1 }
 0x271   : > { %v4191_v0 = vadd.f32 %v4190_v62, %v4189_v14 }
 0x272   : > { %v2911_v25 = vadd.f32 %v4188_v57, %v2814_v19  ;;  %v2817_v54 = vadd.f32 %v4127_v61, %v5443_v6  ;;  %v391_v6 = vld [vmem:[#allocation11 + $0x10] sm:$0xff] }
 0x274   : > { %v2973_v2 = vadd.f32 %v2911_v25, %v389_v24  ;;  %v2914_v32 = vadd.f32 %v4191_v0, %v2817_v54  ;;  %v4128_v50 = vpop.f32.mrb[100].mxu0 }
 0x275   : > { %v4192_v7 = vpop.f32.mrb[100].mxu1  ;;  %v4129_v11 = vpop.f32.mrb[101].mxu0 }
 0x276   : > { %2989 = vst [vmem:[#allocation11] sm:$0xff] %v2973_v2  ;;  %v2974_v13 = vadd.f32 %v2914_v32, %v390_v1  ;;  %v4130_v31 = vadd.f32 %v4129_v11, %v4128_v50  ;;  %v4193_v16 = vpop.f32.mrb[101].mxu1  ;;  %v4131_v17 = vpop.f32.mrb[102].mxu0 }
 0x277   : > { %v4194_v18 = vadd.f32 %v4193_v16, %v4192_v7  ;;  %v4195_v37 = vpop.f32.mrb[102].mxu1  ;;  %v4132_v40 = vpop.f32.mrb[103].mxu0 }
 0x278   : > { %2990 = vst [vmem:[#allocation11 + $0x8] sm:$0xff] %v2974_v13  ;;  %v2822_v20 = vadd.f32 %v4130_v31, %v5446_v59  ;;  %v4133_v43 = vadd.f32 %v4132_v40, %v4131_v17  ;;  %v4196_v21 = vpop.f32.mrb[103].mxu1  ;;  %v396_v13 = vld [vmem:[#allocation11 + $0x38] sm:$0xff] }
 0x279   : > { %v4197_v23 = vadd.f32 %v4196_v21, %v4195_v37 }
 0x27a   : > { %v2919_v56 = vadd.f32 %v4194_v18, %v2822_v20  ;;  %v2825_v8 = vadd.f32 %v4133_v43, %v5449_v22  ;;  %v393_v22 = vld [vmem:[#allocation11 + $0x20] sm:$0xff] }
 0x27c   : > { %v2975_v28 = vadd.f32 %v2919_v56, %v391_v6  ;;  %v2922_v52 = vadd.f32 %v4197_v23, %v2825_v8  ;;  %v4134_v48 = vpop.f32.mrb[104].mxu0 }
 0x27d   : > { %v4198_v34 = vpop.f32.mrb[104].mxu1  ;;  %v4135_v35 = vpop.f32.mrb[105].mxu0 }
 0x27e   : > { %2991 = vst [vmem:[#allocation11 + $0x10] sm:$0xff] %v2975_v28  ;;  %v2976_v36 = vadd.f32 %v2922_v52, %v392_v27  ;;  %v4136_v58 = vadd.f32 %v4135_v35, %v4134_v48  ;;  %v4199_v39 = vpop.f32.mrb[105].mxu1  ;;  %v4137_v63 = vpop.f32.mrb[106].mxu0 }
 0x27f   : > { %v4200_v41 = vadd.f32 %v4199_v39, %v4198_v34  ;;  %v4201_v59 = vpop.f32.mrb[106].mxu1  ;;  %v4138_v42 = vpop.f32.mrb[107].mxu0  ;;  %v398_v34 = vld [vmem:[#allocation11 + $0x48] sm:$0xff] }
 0x280   : > { %2992 = vst [vmem:[#allocation11 + $0x18] sm:$0xff] %v2976_v36  ;;  %v2830_v9 = vadd.f32 %v4136_v58, %v5452_v15  ;;  %v4139_v30 = vadd.f32 %v4138_v42, %v4137_v63  ;;  %v4202_v45 = vpop.f32.mrb[107].mxu1 }
 0x281   : > { %v4203_v46 = vadd.f32 %v4202_v45, %v4201_v59 }
 0x282   : > { %v2927_v10 = vadd.f32 %v4200_v41, %v2830_v9  ;;  %v2833_v4 = vadd.f32 %v4139_v30, %v5455_v38  ;;  %v395_v38 = vld [vmem:[#allocation11 + $0x30] sm:$0xff] }
 0x284   : > { %v2977_v53 = vadd.f32 %v2927_v10, %v393_v22  ;;  %v2930_v57 = vadd.f32 %v4203_v46, %v2833_v4  ;;  %v4140_v14 = vpop.f32.mrb[108].mxu0 }
 0x285   : > { %v4204_v60 = vpop.f32.mrb[108].mxu1  ;;  %v4141_v19 = vpop.f32.mrb[109].mxu0 }
 0x286   : > { %2993 = vst [vmem:[#allocation11 + $0x20] sm:$0xff] %v2977_v53  ;;  %v2978_v61 = vadd.f32 %v2930_v57, %v394_v51  ;;  %v4142_v62 = vadd.f32 %v4141_v19, %v4140_v14  ;;  %v4205_v24 = vpop.f32.mrb[109].mxu1  ;;  %v4143_v0 = vpop.f32.mrb[110].mxu0  ;;  %v400_v57 = vld [vmem:[#allocation11 + $0x58] sm:$0xff] }
 0x287   : > { %v4206_v25 = vadd.f32 %v4205_v24, %v4204_v60  ;;  %v4207_v15 = vpop.f32.mrb[110].mxu1  ;;  %v4144_v54 = vpop.f32.mrb[111].mxu0 }
 0x288   : > { %2994 = vst [vmem:[#allocation11 + $0x28] sm:$0xff] %v2978_v61  ;;  %v2838_v1 = vadd.f32 %v4142_v62, %v5458_v33  ;;  %v4145_v2 = vadd.f32 %v4144_v54, %v4143_v0  ;;  %v4208_v32 = vpop.f32.mrb[111].mxu1 }
 0x289   : > { %v4209_v50 = vadd.f32 %v4208_v32, %v4207_v15 }
 0x28a   : > { %v2935_v7 = vadd.f32 %v4206_v25, %v2838_v1  ;;  %v2841_v11 = vadd.f32 %v4145_v2, %v5461_v55  ;;  %v397_v55 = vld [vmem:[#allocation11 + $0x40] sm:$0xff] }
 0x28c   : > { %v2979_v31 = vadd.f32 %v2935_v7, %v395_v38  ;;  %v2938_v16 = vadd.f32 %v4209_v50, %v2841_v11  ;;  %v4146_v17 = vpop.f32.mrb[112].mxu0 }
 0x28d   : > { %v4210_v18 = vpop.f32.mrb[112].mxu1  ;;  %v4147_v37 = vpop.f32.mrb[113].mxu0 }
 0x28e   : > { %2995 = vst [vmem:[#allocation11 + $0x30] sm:$0xff] %v2979_v31  ;;  %v2980_v40 = vadd.f32 %v2938_v16, %v396_v13  ;;  %v4148_v20 = vadd.f32 %v4147_v37, %v4146_v17  ;;  %v4211_v43 = vpop.f32.mrb[113].mxu1  ;;  %v4149_v21 = vpop.f32.mrb[114].mxu0  ;;  %v402_v13 = vld [vmem:[#allocation11 + $0x68] sm:$0xff] }
 0x28f   : > { %v4212_v6 = vadd.f32 %v4211_v43, %v4210_v18  ;;  %v4213_v33 = vpop.f32.mrb[114].mxu1  ;;  %v4150_v23 = vpop.f32.mrb[115].mxu0 }
 0x290   : > { %2996 = vst [vmem:[#allocation11 + $0x38] sm:$0xff] %v2980_v40  ;;  %v2846_v56 = vadd.f32 %v4148_v20, %v5464_v49  ;;  %v4151_v8 = vadd.f32 %v4150_v23, %v4149_v21  ;;  %v4214_v27 = vpop.f32.mrb[115].mxu1 }
 0x291   : > { %v4215_v28 = vadd.f32 %v4214_v27, %v4213_v33 }
 0x292   : > { %v2943_v52 = vadd.f32 %v4212_v6, %v2846_v56  ;;  %v2849_v48 = vadd.f32 %v4151_v8, %v5467_v12  ;;  %v399_v12 = vld [vmem:[#allocation11 + $0x50] sm:$0xff] }
 0x294   : > { %v2981_v35 = vadd.f32 %v2943_v52, %v397_v55  ;;  %v2946_v36 = vadd.f32 %v4215_v28, %v2849_v48  ;;  %v4152_v58 = vpop.f32.mrb[116].mxu0  ;;  %v404_v52 = vld [vmem:[#allocation11 + $0x78] sm:$0xff] }
 0x295   : > { %v4216_v39 = vpop.f32.mrb[116].mxu1  ;;  %v4153_v63 = vpop.f32.mrb[117].mxu0 }
 0x296   : > { %2997 = vst [vmem:[#allocation11 + $0x40] sm:$0xff] %v2981_v35  ;;  %v2982_v41 = vadd.f32 %v2946_v36, %v398_v34  ;;  %v4154_v59 = vadd.f32 %v4153_v63, %v4152_v58  ;;  %v4217_v42 = vpop.f32.mrb[117].mxu1  ;;  %v4155_v9 = vpop.f32.mrb[118].mxu0  ;;  %v4538_v36 = vld [vmem:[#allocation8] sm:$0xff] (!%p3703_p8)   ;;  %v4539_v58 = vld [vmem:[#allocation8 + $0x8] sm:$0xff] (!%p3703_p8)  }
 0x297   : > { %v4218_v30 = vadd.f32 %v4217_v42, %v4216_v39  ;;  %v4219_v49 = vpop.f32.mrb[118].mxu1  ;;  %v4156_v45 = vpop.f32.mrb[119].mxu0  ;;  %4250 = vmatprep.subr.bf16.mxu0 (!%p3703_p8), %v4538_v36  ;;  %4282 = vmatprep.subr.bf16.mxu1 (!%p3703_p8), %v4538_v36  ;;  %v3009_v39 = vld [vmem:[#allocation11] sm:$0xff] (!%p3703_p8)  ;;  %v3010_v63 = vld [vmem:[#allocation11 + $0x8] sm:$0xff] (!%p3703_p8) }
 0x298   : > { %2998 = vst [vmem:[#allocation11 + $0x48] sm:$0xff] %v2982_v41  ;;  %v2854_v22 = vadd.f32 %v4154_v59, %v5470_v5  ;;  %v4157_v46 = vadd.f32 %v4156_v45, %v4155_v9  ;;  %v4220_v10 = vpop.f32.mrb[119].mxu1  ;;  %4251 = vmatpush3.bf16.msra.mxu0 (!%p3703_p8), %v4538_v36  ;;  %4290 = vmatpush3.bf16.msra.mxu1 (!%p3703_p8), %v4538_v36  ;;  %v5504_v41 = vld [vmem:[#allocation7] ss:$0 sm:$0xff] (!%p3703_p8) }
 0x299   : > { %v4221_v4 = vadd.f32 %v4220_v10, %v4219_v49  ;;  %4252 = vmatprep.subr.bf16.mxu0 (!%p3703_p8), %v4539_v58  ;;  %4283 = vmatprep.subr.bf16.mxu1 (!%p3703_p8), %v4539_v58  ;;  %v3032_v59 = vadd.f32 (!%p3703_p8), %v5504_v41, %v3009_v39  ;;  %v3033_v42 = vadd.f32 (!%p3703_p8), %v5504_v41, %v3010_v63  ;;  %v3011_v49 = vld [vmem:[#allocation11 + $0x10] sm:$0xff] (!%p3703_p8) }
 0x29a   : > { %v2951_v51 = vadd.f32 %v4218_v30, %v2854_v22  ;;  %v2857_v53 = vadd.f32 %v4157_v46, %v5473_v29  ;;  %v401_v29 = vld [vmem:[#allocation11 + $0x60] sm:$0xff]  ;;  %v3012_v46 = vld [vmem:[#allocation11 + $0x18] sm:$0xff] (!%p3703_p8)  ;;  %v5511_v10 = vadd.f32 (!%p3703_p8), %v5504_v41, %v3011_v49 }
 0x29c   : > { %v2983_v14 = vadd.f32 %v2951_v51, %v399_v12  ;;  %v2954_v60 = vadd.f32 %v4221_v4, %v2857_v53  ;;  %v4158_v19 = vpop.f32.mrb[120].mxu0  ;;  %4253 = vmatpush3.bf16.msra.mxu0 (!%p3703_p8), %v4539_v58  ;;  %4291 = vmatpush3.bf16.msra.mxu1 (!%p3703_p8), %v4539_v58  ;;  %v3048_v51 = vmax.f32 (!%p3703_p8), %v3032_v59, 0.0  ;;  %v3049_v53 = vmax.f32 (!%p3703_p8), %v3033_v42, 0.0  ;;  %v3705_v58 = vld [vmem:[#allocation10] ss:$0 sm:$0xff] (!%p3703_p8) }
 0x29d   : > { %v4222_v61 = vpop.f32.mrb[120].mxu1  ;;  %v4159_v62 = vpop.f32.mrb[121].mxu0  ;;  %v3017_v9 = vld [vmem:[#allocation11 + $0x40] sm:$0xff] (!%p3703_p8) }
 0x29e   : > { %2999 = vst [vmem:[#allocation11 + $0x50] sm:$0xff] %v2983_v14  ;;  %v2984_v24 = vadd.f32 %v2954_v60, %v400_v57  ;;  %v4160_v0 = vadd.f32 %v4159_v62, %v4158_v19  ;;  %v4223_v25 = vpop.f32.mrb[121].mxu1  ;;  %v4161_v15 = vpop.f32.mrb[122].mxu0  ;;  %v3040_v45 = vadd.f32 (!%p3703_p8), %v5504_v41, %v3017_v9  ;;  %v5514_v57 = vadd.f32 (!%p3703_p8), %v5504_v41, %v3012_v46  ;;  %v3013_v60 = vld [vmem:[#allocation11 + $0x20] sm:$0xff] (!%p3703_p8)  ;;  %v3014_v19 = vld [vmem:[#allocation11 + $0x28] sm:$0xff] (!%p3703_p8) }
 0x29f   : > { %v4224_v54 = vadd.f32 %v4223_v25, %v4222_v61  ;;  %v4225_v5 = vpop.f32.mrb[122].mxu1  ;;  %v4162_v1 = vpop.f32.mrb[123].mxu0  ;;  %v3018_v30 = vld [vmem:[#allocation11 + $0x48] sm:$0xff] (!%p3703_p8)  ;;  %v4542_v62 = vld [vmem:[#allocation8 + $0x20] sm:$0xff] (!%p3703_p8)   ;;  %v3050_v25 = vmax.f32 (!%p3703_p8), %v5511_v10, 0.0  ;;  %3064 = vst [vmem:[#allocation11] sm:$0xff] (!%p3703_p8), %v3048_v51 }
 0x2a0   : > { %3000 = vst [vmem:[#allocation11 + $0x58] sm:$0xff] %v2984_v24  ;;  %v2862_v2 = vadd.f32 %v4160_v0, %v5476_v26  ;;  %v4163_v32 = vadd.f32 %v4162_v1, %v4161_v15  ;;  %v4226_v38 = vpop.f32.mrb[123].mxu1  ;;  %v3041_v22 = vadd.f32 (!%p3703_p8), %v5504_v41, %v3018_v30  ;;  %v3056_v24 = vmax.f32 (!%p3703_p8), %v3040_v45, 0.0  ;;  %3065 = vst [vmem:[#allocation11 + $0x8] sm:$0xff] (!%p3703_p8), %v3049_v53 }
 0x2a1   : > { %v4227_v50 = vadd.f32 %v4226_v38, %v4225_v5  ;;  %v3015_v5 = vld [vmem:[#allocation11 + $0x30] sm:$0xff] (!%p3703_p8)  ;;  %v3080_v1 = vpack.c.bf16 (!%p3703_p8), %v3049_v53, %v3048_v51  ;;  %v3036_v38 = vadd.f32 (!%p3703_p8), %v5504_v41, %v3013_v60  ;;  %3066 = vst [vmem:[#allocation11 + $0x10] sm:$0xff] (!%p3703_p8), %v3050_v25 }
 0x2a2   : > { %v2959_v7 = vadd.f32 %v4224_v54, %v2862_v2  ;;  %v2865_v11 = vadd.f32 %v4163_v32, %v5479_v47  ;;  %v403_v47 = vld [vmem:[#allocation11 + $0x70] sm:$0xff]  ;;  %v3057_v0 = vmax.f32 (!%p3703_p8), %v3041_v22, 0.0  ;;  %v3051_v2 = vmax.f32 (!%p3703_p8), %v5514_v57, 0.0  ;;  %3072 = vst [vmem:[#allocation11 + $0x40] sm:$0xff] (!%p3703_p8), %v3056_v24 }
 0x2a3   : > { %4266 = vmatprep.mubr.bf16.mxu0 (!%p3703_p8), %v3080_v1 }
 0x2a4   : > { %v2985_v31 = vadd.f32 %v2959_v7, %v401_v29  ;;  %v2962_v16 = vadd.f32 %v4227_v50, %v2865_v11  ;;  %v4164_v17 = vpop.f32.mrb[124].mxu0  ;;  %v3016_v29 = vld [vmem:[#allocation11 + $0x38] sm:$0xff] (!%p3703_p8)  ;;  %3073 = vst [vmem:[#allocation11 + $0x48] sm:$0xff] (!%p3703_p8), %v3057_v0  ;;  %v3084_v50 = vpack.c.bf16 (!%p3703_p8), %v3057_v0, %v3056_v24  ;;  %v3037_v11 = vadd.f32 (!%p3703_p8), %v5504_v41, %v3014_v19 }
 0x2a5   : > { %v4228_v18 = vpop.f32.mrb[124].mxu1  ;;  %v4165_v37 = vpop.f32.mrb[125].mxu0  ;;  %v3019_v12 = vld [vmem:[#allocation11 + $0x50] sm:$0xff] (!%p3703_p8)  ;;  %3067 = vst [vmem:[#allocation11 + $0x18] sm:$0xff] (!%p3703_p8), %v3051_v2 }
 0x2a6   : > { %3001 = vst [vmem:[#allocation11 + $0x60] sm:$0xff] %v2985_v31  ;;  %v2986_v40 = vadd.f32 %v2962_v16, %v402_v13  ;;  %v4166_v20 = vadd.f32 %v4165_v37, %v4164_v17  ;;  %v4229_v43 = vpop.f32.mrb[125].mxu1  ;;  %v4167_v21 = vpop.f32.mrb[126].mxu0  ;;  %v5517_v14 = vadd.f32 (!%p3703_p8), %v5504_v41, %v3019_v12  ;;  %v3052_v17 = vmax.f32 (!%p3703_p8), %v3036_v38, 0.0  ;;  %4274 = vmatprep.mubr.bf16.mxu1 (!%p3703_p8), %v3084_v50 }
 0x2a7   : > { %v4230_v6 = vadd.f32 %v4229_v43, %v4228_v18  ;;  %v4231_v26 = vpop.f32.mrb[126].mxu1  ;;  %v4168_v33 = vpop.f32.mrb[127].mxu0  ;;  %v3020_v4 = vld [vmem:[#allocation11 + $0x58] sm:$0xff] (!%p3703_p8)  ;;  %v3038_v37 = vadd.f32 (!%p3703_p8), %v5504_v41, %v3015_v5 }
 0x2a8   : > { %3002 = vst [vmem:[#allocation11 + $0x68] sm:$0xff] %v2986_v40  ;;  %v2870_v23 = vadd.f32 %v4166_v20, %v5482_v44  ;;  %v4169_v56 = vadd.f32 %v4168_v33, %v4167_v21  ;;  %v4232_v8 = vpop.f32.mrb[127].mxu1  ;;  %v4540_v44 = vld [vmem:[#allocation8 + $0x10] sm:$0xff] (!%p3703_p8)   ;;  %v5521_v15 = vadd.f32 (!%p3703_p8), %v5504_v41, %v3020_v4  ;;  %v3058_v32 = vmax.f32 (!%p3703_p8), %v5517_v14, 0.0  ;;  %v4543_v40 = vld [vmem:[#allocation8 + $0x28] sm:$0xff] (!%p3703_p8)   ;;  %3068 = vst [vmem:[#allocation11 + $0x20] sm:$0xff] (!%p3703_p8), %v3052_v17 }
 0x2a9   : > { %v4233_v27 = vadd.f32 %v4232_v8, %v4231_v26  ;;  %4254 = vmatprep.subr.bf16.mxu0 (!%p3703_p8), %v4540_v44  ;;  %4284 = vmatprep.subr.bf16.mxu1 (!%p3703_p8), %v4540_v44  ;;  %v3053_v20 = vmax.f32 (!%p3703_p8), %v3037_v11, 0.0  ;;  %v3039_v21 = vadd.f32 (!%p3703_p8), %v5504_v41, %v3016_v29  ;;  %v3054_v26 = vmax.f32 (!%p3703_p8), %v3038_v37, 0.0 }
 0x2aa   : > { %v2967_v55 = vadd.f32 %v4230_v6, %v2870_v23  ;;  %v2873_v28 = vadd.f32 %v4169_v56, %v5485_v3  ;;  %3008 = sbr.rel (%p3703_p8) target bundleno = 931 (0x3a3), region = 68  ;;  %v4541_v3 = vld [vmem:[#allocation8 + $0x18] sm:$0xff] (!%p3703_p8)   ;;  %4255 = vmatpush3.bf16.msra.mxu0 (!%p3703_p8), %v4540_v44  ;;  %4292 = vmatpush3.bf16.msra.mxu1 (!%p3703_p8), %v4540_v44  ;;  %v3059_v7 = vmax.f32 (!%p3703_p8), %v5521_v15, 0.0  ;;  %3074 = vst [vmem:[#allocation11 + $0x50] sm:$0xff] (!%p3703_p8), %v3058_v32 }
 0x2ab   : > { %4256 = vmatprep.subr.bf16.mxu0 (!%p3703_p8), %v4541_v3  ;;  %4285 = vmatprep.subr.bf16.mxu1 (!%p3703_p8), %v4541_v3  ;;  %3069 = vst [vmem:[#allocation11 + $0x28] sm:$0xff] (!%p3703_p8), %v3053_v20  ;;  %v3055_v56 = vmax.f32 (!%p3703_p8), %v3039_v21, 0.0  ;;  %3070 = vst [vmem:[#allocation11 + $0x30] sm:$0xff] (!%p3703_p8), %v3054_v26 }
 0x2ac   : > { %v2987_v48 = vadd.f32 %v2967_v55, %v403_v47  ;;  %v2970_v34 = vadd.f32 %v4233_v27, %v2873_v28  ;;  %3075 = vst [vmem:[#allocation11 + $0x58] sm:$0xff] (!%p3703_p8), %v3059_v7  ;;  %v4544_v27 = vld [vmem:[#allocation8 + $0x30] sm:$0xff] (!%p3703_p8)   ;;  %v4545_v55 = vld [vmem:[#allocation8 + $0x38] sm:$0xff] (!%p3703_p8)   ;;  %v3081_v28 = vpack.c.bf16 (!%p3703_p8), %v3051_v2, %v3050_v25 }
 0x2ad   : > { %v3021_v61 = vld [vmem:[#allocation11 + $0x60] sm:$0xff] (!%p3703_p8)  ;;  %3071 = vst [vmem:[#allocation11 + $0x38] sm:$0xff] (!%p3703_p8), %v3055_v56 }
 0x2ae   : > { %3003 = vst [vmem:[#allocation11 + $0x70] sm:$0xff] %v2987_v48  ;;  %v2988_v35 = vadd.f32 %v2970_v34, %v404_v52  ;;  %v3044_v13 = vadd.f32 (!%p3703_p8), %v5504_v41, %v3021_v61  ;;  %4257 = vmatpush3.bf16.msra.mxu0 (!%p3703_p8), %v4541_v3  ;;  %4293 = vmatpush3.bf16.msra.mxu1 (!%p3703_p8), %v4541_v3 }
 0x2af   : > { %v3022_v54 = vld [vmem:[#allocation11 + $0x68] sm:$0xff] (!%p3703_p8)  ;;  %4258 = vmatprep.subr.bf16.mxu0 (!%p3703_p8), %v4542_v62  ;;  %4286 = vmatprep.subr.bf16.mxu1 (!%p3703_p8), %v4542_v62  ;;  %v3085_v52 = vpack.c.bf16 (!%p3703_p8), %v3059_v7, %v3058_v32  ;;  %v3082_v48 = vpack.c.bf16 (!%p3703_p8), %v3053_v20, %v3052_v17 }
 0x2b0   : > { %3004 = vst [vmem:[#allocation11 + $0x78] sm:$0xff] %v2988_v35  ;;  %v3045_v18 = vadd.f32 (!%p3703_p8), %v5504_v41, %v3022_v54  ;;  %v3060_v43 = vmax.f32 (!%p3703_p8), %v3044_v13, 0.0  ;;  %v3083_v35 = vpack.c.bf16 (!%p3703_p8), %v3055_v56, %v3054_v26 }
 0x2b2   : > { %v3061_v6 = vmax.f32 %v3045_v18, 0.0  ;;  %3076 = vst [vmem:[#allocation11 + $0x60] sm:$0xff] %v3060_v43  ;;  %4259 = vmatpush3.bf16.msra.mxu0 %v4542_v62  ;;  %4294 = vmatpush3.bf16.msra.mxu1 %v4542_v62 }
 0x2b3   : > { %4260 = vmatprep.subr.bf16.mxu0 %v4543_v40  ;;  %4287 = vmatprep.subr.bf16.mxu1 %v4543_v40 }
 0x2b4   : > { %3077 = vst [vmem:[#allocation11 + $0x68] sm:$0xff] %v3061_v6  ;;  %v3086_v34 = vpack.c.bf16 %v3061_v6, %v3060_v43 }
 0x2b5   : > { %v3023_v31 = vld [vmem:[#allocation11 + $0x70] sm:$0xff] }
 0x2b6   : > { %v3046_v33 = vadd.f32 %v5504_v41, %v3023_v31  ;;  %4261 = vmatpush3.bf16.msra.mxu0 %v4543_v40  ;;  %4295 = vmatpush3.bf16.msra.mxu1 %v4543_v40 }
 0x2b7   : > { %v3024_v16 = vld [vmem:[#allocation11 + $0x78] sm:$0xff]  ;;  %4262 = vmatprep.subr.bf16.mxu0 %v4544_v27  ;;  %4288 = vmatprep.subr.bf16.mxu1 %v4544_v27 }
 0x2b8   : > { %v3047_v23 = vadd.f32 %v5504_v41, %v3024_v16  ;;  %v3062_v8 = vmax.f32 %v3046_v33, 0.0 }
 0x2ba   : > { %v3063_v47 = vmax.f32 %v3047_v23, 0.0  ;;  %3078 = vst [vmem:[#allocation11 + $0x70] sm:$0xff] %v3062_v8  ;;  %4263 = vmatpush3.bf16.msra.mxu0 %v4544_v27  ;;  %4296 = vmatpush3.bf16.msra.mxu1 %v4544_v27 }
 0x2bb   : > { %4264 = vmatprep.subr.bf16.mxu0 %v4545_v55  ;;  %4289 = vmatprep.subr.bf16.mxu1 %v4545_v55 }
 0x2bc   : > { %3079 = vst [vmem:[#allocation11 + $0x78] sm:$0xff] %v3063_v47  ;;  %v3087_v36 = vpack.c.bf16 %v3063_v47, %v3062_v8 }
 0x2be   : > { %4265 = vmatpush3.bf16.msra.mxu0 %v4545_v55  ;;  %4297 = vmatpush3.bf16.msra.mxu1 %v4545_v55 }
 0x2c1   : > { %4267 = vmatmul.mubr.bf16.vlgmr.msra.gmra.mrb[0].mxu0 %v3081_v28  ;;  %4275 = vmatmul.mubr.bf16.vlgmr.msra.gmra.mrb[0].mxu1 %v3085_v52 }
 0x2c2   : > { %4270 = vmatprep.mubr.bf16.mxu0 %v3082_v48  ;;  %4278 = vmatprep.mubr.bf16.mxu1 %v3086_v34 }
 0x2c9   : > { %4271 = vmatmul.mubr.bf16.gmra.mrb[4].mxu0 %v3083_v35  ;;  %4279 = vmatmul.mubr.bf16.gmra.mrb[4].mxu1 %v3087_v36 }
 0x394   : > { %v4268_v44 = vpop.f32.mrb[0].mxu0  ;;  %v4276_v3 = vpop.f32.mrb[0].mxu1 }
 0x395   : > { %v3202_v39 = vadd.f32 %v4268_v44, %v3705_v58  ;;  %v3234_v63 = vadd.f32 %v4276_v3, %v3705_v58  ;;  %v3193_v41 = vpop.f32.mrb[1].mxu0  ;;  %v3225_v59 = vpop.f32.mrb[1].mxu1 }
 0x396   : > { %v3194_v42 = vadd.f32 %v3705_v58, %v3193_v41  ;;  %v3226_v9 = vadd.f32 %v3705_v58, %v3225_v59  ;;  %v4269_v30 = vpop.f32.mrb[2].mxu0  ;;  %v4277_v49 = vpop.f32.mrb[2].mxu1 }
 0x397   : > { %3258 = vst [vmem:[#allocation12 + $0x10] sm:$0xff] %v3202_v39  ;;  %3266 = vst [vmem:[#allocation12 + $0x50] sm:$0xff] %v3234_v63  ;;  %v3205_v45 = vadd.f32 %v4269_v30, %v3705_v58  ;;  %v3237_v22 = vadd.f32 %v4277_v49, %v3705_v58  ;;  %v3196_v46 = vpop.f32.mrb[3].mxu0  ;;  %v3228_v10 = vpop.f32.mrb[3].mxu1 }
 0x398   : > { %3256 = vst [vmem:[#allocation12] sm:$0xff] %v3194_v42  ;;  %3264 = vst [vmem:[#allocation12 + $0x40] sm:$0xff] %v3226_v9  ;;  %v3197_v12 = vadd.f32 %v3705_v58, %v3196_v46  ;;  %v3229_v4 = vadd.f32 %v3705_v58, %v3228_v10 }
 0x399   : > { %3259 = vst [vmem:[#allocation12 + $0x18] sm:$0xff] %v3205_v45  ;;  %3267 = vst [vmem:[#allocation12 + $0x58] sm:$0xff] %v3237_v22 }
 0x39a   : > { %3257 = vst [vmem:[#allocation12 + $0x8] sm:$0xff] %v3197_v12  ;;  %3265 = vst [vmem:[#allocation12 + $0x48] sm:$0xff] %v3229_v4 }
 0x39c   : > { %v4272_v51 = vpop.f32.mrb[4].mxu0  ;;  %v4280_v53 = vpop.f32.mrb[4].mxu1 }
 0x39d   : > { %v3218_v57 = vadd.f32 %v4272_v51, %v3705_v58  ;;  %v3250_v14 = vadd.f32 %v4280_v53, %v3705_v58  ;;  %v3209_v60 = vpop.f32.mrb[5].mxu0  ;;  %v3241_v19 = vpop.f32.mrb[5].mxu1 }
 0x39e   : > { %v3210_v61 = vadd.f32 %v3705_v58, %v3209_v60  ;;  %v3242_v62 = vadd.f32 %v3705_v58, %v3241_v19  ;;  %v4273_v24 = vpop.f32.mrb[6].mxu0  ;;  %v4281_v0 = vpop.f32.mrb[6].mxu1 }
 0x39f   : > { %3262 = vst [vmem:[#allocation12 + $0x30] sm:$0xff] %v3218_v57  ;;  %3270 = vst [vmem:[#allocation12 + $0x70] sm:$0xff] %v3250_v14  ;;  %v3221_v25 = vadd.f32 %v4273_v24, %v3705_v58  ;;  %v3253_v15 = vadd.f32 %v4281_v0, %v3705_v58  ;;  %v3212_v54 = vpop.f32.mrb[7].mxu0  ;;  %v3244_v5 = vpop.f32.mrb[7].mxu1 }
 0x3a0   : > { %3260 = vst [vmem:[#allocation12 + $0x20] sm:$0xff] %v3210_v61  ;;  %3268 = vst [vmem:[#allocation12 + $0x60] sm:$0xff] %v3242_v62  ;;  %v3213_v1 = vadd.f32 %v3705_v58, %v3212_v54  ;;  %v3245_v2 = vadd.f32 %v3705_v58, %v3244_v5 }
 0x3a1   : > { %3263 = vst [vmem:[#allocation12 + $0x38] sm:$0xff] %v3221_v25  ;;  %3271 = vst [vmem:[#allocation12 + $0x78] sm:$0xff] %v3253_v15 }
 0x3a2   : > { %3261 = vst [vmem:[#allocation12 + $0x28] sm:$0xff] %v3213_v1  ;;  %3269 = vst [vmem:[#allocation12 + $0x68] sm:$0xff] %v3245_v2 }
 0x3a3 PF: > { %p4346_p1 = scmp.eq.s32.totalorder %s4892_s27, 8  ;;  %s4824_s24 = smov [#allocation11]  }
 0x3a4   : > { %s3281_s29 = sshll.u32 %s4824_s24, 4  ;;  %s3282_s29 = int_to_ptr.vmem [resolvable:$true] %s3281_s29 }
 0x3a5   : > { %s4690_s30 = scalar_lea.vmem %s3282_s29, 2048  ;;  %p4697_p7 = scmp.lt.s32.totalorder %s3282_s29, %s3282_s29 }
 0x3a6   : > { %p4691_p2 = scmp.ne.s32.totalorder %s3282_s29, %s4690_s30  ;;  %p4698_p9 = scmp.lt.s32.totalorder %s4690_s30, %s4690_s30 }
 0x3a8   : > { %p4692_p12 = pnand %p4691_p2, %p4346_p1  ;;  %p4699_p6 = por %p4698_p9, %p4697_p7 }
 0x3aa   : > { %p4693_p4 = pneg %p4692_p12 }
 0x3ac   : > { %p4700_p5 = pnand %p4699_p6, %p4693_p4 }
 0x3ae   : > { %4703 = shalt.err (!%p4700_p5)
}
 0x3af   : > { %s4704_s17 = scalar_lea.hbm %s5606_s5, 2048 }
 0x3b0   : > { %p4705_p3 = scmp.ne.s32.totalorder %s5606_s5, %s4704_s17  ;;  %p4710_p11 = scmp.lt.u32.totalorder %s4704_s17, %s5606_s5 }
 0x3b2   : > { %p4706_p10 = pnand %p4705_p3, %p4346_p1 }
 0x3b4   : > { %p4707_p0 = pneg %p4706_p10 }
 0x3b6   : > { %p4712_p13 = pnand %p4710_p11, %p4707_p0 }
 0x3b8   : > { %4715 = shalt.err (!%p4712_p13)
}
 0x3b9   : > { %s4825_s21 = smov 128   ;;  %s4826_s12 = smov 8  }
 0x3ba   : > { %4315 = dma.vmem_to_hbm [thread:$0]  (%p4346_p1), %s3282_s29, 2048, %s5606_s5, [#allocation4], %s4825_s21, %s4825_s21, %s4826_s12  }
 0x3bb   : > { %s4827_s9 = smov [#allocation12]  }
 0x3bc   : > { %s3297_s20 = sshll.u32 %s4827_s9, 4  ;;  %s3298_s20 = int_to_ptr.vmem [resolvable:$true] %s3297_s20 }
 0x3bd   : > { %s4716_s7 = scalar_lea.vmem %s3298_s20, 2048  ;;  %p4723_p4 = scmp.lt.s32.totalorder %s3298_s20, %s3298_s20 }
 0x3be   : > { %p4717_p8 = scmp.ne.s32.totalorder %s3298_s20, %s4716_s7  ;;  %p4724_p7 = scmp.lt.s32.totalorder %s4716_s7, %s4716_s7 }
 0x3c0   : > { %p4718_p2 = pnand %p4717_p8, %p4346_p1  ;;  %p4725_p9 = por %p4724_p7, %p4723_p4 }
 0x3c2   : > { %p4719_p12 = pneg %p4718_p2 }
 0x3c4   : > { %p4726_p6 = pnand %p4725_p9, %p4719_p12 }
 0x3c6   : > { %4729 = shalt.err (!%p4726_p6)
}
 0x3c7   : > { %s4730_s0 = scalar_lea.hbm %s5607_s6, 2048 }
 0x3c8   : > { %p4731_p5 = scmp.ne.s32.totalorder %s5607_s6, %s4730_s0  ;;  %p4736_p0 = scmp.lt.u32.totalorder %s4730_s0, %s5607_s6 }
 0x3ca   : > { %p4732_p3 = pnand %p4731_p5, %p4346_p1 }
 0x3cc   : > { %p4733_p10 = pneg %p4732_p3 }
 0x3ce   : > { %p4738_p11 = pnand %p4736_p0, %p4733_p10 }
 0x3d0   : > { %4741 = shalt.err (!%p4738_p11)
}
 0x3d1   : > { %4317 = dma.vmem_to_hbm [thread:$0]  (%p4346_p1), %s3298_s20, 2048, %s5607_s6, [#allocation13], %s4825_s21, %s4825_s21, %s4826_s12  }
 0x3d2   : > { %4783 = dma.done.wait (%p4346_p1), [#allocation4], 2048  }
 0x3d3   : > { %4785 = vsyncadd (%p4346_p1), [#allocation4], 4294965248 }
 0x3d4   : > { %4787 = dma.done.wait (%p4346_p1), [#allocation13], 2048  }
 0x3d5   : > { %4789 = vsyncadd (%p4346_p1), [#allocation13], 4294965248 }
 0x3d6 PF: > { %s26_s26 = sadd.s32 1, %s4812_s26   ;;  %s5633_s21 = smov %s4796_s22 }
 0x3d7   : > { %p23_p13 = scmp.ge.s32.totalorder %s26_s26, 11   ;;  %s5634_s22 = smov %s4800_s23 }
 0x3d8   : > { %s5635_s23 = smov %s5008_s13  ;;  %s5636_s24 = smov %s4808_s25 }
 0x3d9   : > { %s5637_s25 = smov %s5639_s2  ;;  %25 = sbr.rel (!%p23_p13) target bundleno = 13 (0xd), region = 120 }
 0x3e0   :  { %3317 = vsyncpa [#allocation3], 1 }
 0x3e1   :  { %3319 = vsyncpa [#allocation3 + $0x1], 1 }
 0x3e2   :  { %3320 = vsyncpa [#allocation6], 1 }
 0x3e3   :  { %3322 = vsyncpa [#allocation6 + $0x1], 1 }
 0x3e4   :  { %3323 = vsyncpa [#allocation9], 1 }
 0x3e5   :  { %3324 = vsyncpa [#allocation4], 1 }
 0x3e6   :  { %3326 = vsyncpa [#allocation4 + $0x1], 1 }
 0x3e7   :  { %3327 = vsyncpa [#allocation13], 1 }

</bundles_post_ra>
